<compile_context>
chip_gen: v7x
topology: tpu7x:2x2x1
jax: 0.10.0
libtpu: 0.0.40
codegen_flags: <defaults>
</compile_context>

<pallas_src>
from functools import partial

import jax
import jax.numpy as jnp
from jax.experimental import pallas as pl
from jax.experimental.pallas import tpu as pltpu


def cross_transformer_kernel(x1_ref, x2_ref, wq_ref, wkv_ref, wp_ref,
                             ln1w_ref, ln1b_ref, ln2w_ref, ln2b_ref,
                             temp_ref, bias_ref, o_ref, *, hw_valid):
    bt, C, HWp = x1_ref.shape

    # Small, step-invariant operands (resident VMEM blocks, constant index_map).
    wq = wq_ref[...]                    # (C, C)
    wkv = wkv_ref[...]                  # (2C, C)   [Wk; Wv]
    wp = wp_ref[...]                    # (C, C)
    ln1w = ln1w_ref[...]                # (C, 1)
    ln1b = ln1b_ref[...]                # (C, 1)
    ln2w = ln2w_ref[...]                # (C, 1)
    ln2b = ln2b_ref[...]                # (C, 1)
    temp = temp_ref[...]                # (C, 1) per-channel-row temperature
    head_bias = bias_ref[...]           # (C, C) additive block-diagonal mask

    # Lane mask for padded spatial columns (only emitted when padding exists).
    if HWp != hw_valid:
        lane = jax.lax.broadcasted_iota(jnp.int32, (1, HWp), 1)
        lanemask = (lane < hw_valid).astype(jnp.float32)
    else:
        lanemask = None

    def layer_norm(x, w, b):
        # WithBias LayerNorm over the channel axis (per pixel), unbiased=False.
        mu = jnp.mean(x, axis=0, keepdims=True)                # (1, HWp)
        xc = x - mu
        var = jnp.mean(xc * xc, axis=0, keepdims=True)
        y = xc * jax.lax.rsqrt(var + 1e-5) * w + b             # (C, HWp)
        # Zero padded pixels so L2 norms / Gram / v ignore them.
        return y if lanemask is None else y * lanemask

    # Static unrolled loop over the batch items of this step (bt is tiny).
    for bi in range(bt):
        x1 = x1_ref[bi]                                        # (C, HWp)
        x2 = x2_ref[bi]                                        # (C, HWp)

        xn1 = layer_norm(x1, ln1w, ln1b)
        xn2 = layer_norm(x2, ln2w, ln2b)

        # 1x1 convs: q from stream 1, fused [k; v] from stream 2 (weights are
        # (out, in) and multiply from the left in channel-major layout).
        q = jnp.dot(wq, xn1, preferred_element_type=jnp.float32)    # (C, HWp)
        kv = jnp.dot(wkv, xn2, preferred_element_type=jnp.float32)  # (2C, HWp)
        k = kv[:C]                                                   # (C, HWp)
        v = kv[C:]                                                   # (C, HWp)

        # L2 norms over the spatial axis (F.normalize semantics, eps=1e-12).
        q_norm = jnp.sqrt(jnp.sum(q * q, axis=-1, keepdims=True))   # (C, 1)
        k_norm = jnp.sqrt(jnp.sum(k * k, axis=-1, keepdims=True))   # (C, 1)
        # temperature/||q|| is applied to the tiny (C,C) Gram rows, not the slab.
        row_scale = temp / jnp.maximum(q_norm, 1e-12)                # (C, 1)
        kn = k * (1.0 / jnp.maximum(k_norm, 1e-12))                  # (C, HWp)

        # Fused block-diagonal channel attention:
        # s[c,d] = temp[head(c)]/||q_c|| * <q[c,:], k_n[d,:]>, off-head masked.
        # TODO(synk): verify the NT dot_general lowers without a materialized
        #   XLU transpose of kn at Restormer-scale HW.
        s = jax.lax.dot_general(q, kn, (((1,), (1,)), ((), ())),
                                preferred_element_type=jnp.float32)  # (C, C)
        s = s * row_scale + head_bias

        # Row softmax (EUP approx reciprocal + one Newton step -> f32 accurate).
        s = s - jnp.max(s, axis=-1, keepdims=True)
        p = jnp.exp(s)
        denom = jnp.sum(p, axis=-1, keepdims=True)
        r = pl.reciprocal(denom, approx=True)
        r = r * (2.0 - denom * r)
        p = p * r                                                    # (C, C)

        # Reassociated epilogue: (Wp @ P) is (C,C)x(C,C); only ONE (C,HWp) matmul.
        wpp = jnp.dot(wp, p, preferred_element_type=jnp.float32)     # (C, C)
        proj = jnp.dot(wpp, v, preferred_element_type=jnp.float32)   # (C, HWp)

        # Residual with stream 1 (padded lanes stay exactly zero).
        o_ref[bi] = x1 + proj


def cross_transformer(x1_nchw, x2_nchw, params, num_heads):
    B, C, H, W = x1_nchw.shape
    assert C % num_heads == 0
    HW = H * W
    CH = C // num_heads

    # Lane-dense spatial padding (multiple of 128). No-op for aligned HW.
    HWp = ((HW + 127) // 128) * 128

    # Free trailing-dim reshapes; pad only if needed.
    x1 = x1_nchw.reshape(B, C, HW)
    x2 = x2_nchw.reshape(B, C, HW)
    if HWp != HW:
        pad = ((0, 0), (0, 0), (0, HWp - HW))
        x1 = jnp.pad(x1, pad)
        x2 = jnp.pad(x2, pad)

    # Fuse K/V projection weights: one (2C, C) left-matmul, no transposes.
    # (Copy-free row split in-kernel requires C % 8 == 0; true here.)
    wkv = jnp.concatenate([params["wk"], params["wv"]], axis=0)      # (2C, C)

    ln1w = params["ln1_weight"].reshape(C, 1)
    ln1b = params["ln1_bias"].reshape(C, 1)
    ln2w = params["ln2_weight"].reshape(C, 1)
    ln2b = params["ln2_bias"].reshape(C, 1)
    temp_col = jnp.repeat(params["temperature"].reshape(num_heads), CH).reshape(C, 1)

    # Precomputed additive block-diagonal head mask (loop-invariant, VMEM-resident).
    head = jnp.arange(C, dtype=jnp.int32) // CH
    head_bias = jnp.where(head[:, None] == head[None, :], 0.0, -1e30)
    head_bias = head_bias.astype(jnp.float32)                        # (C, C)

    # Batch tiling: fuse the whole batch into one grid step when the working set
    # is small (grid-step overhead dominates at tiny shapes); else one item/step.
    bytes_per_item = 16 * C * HWp * 4          # conservative live-slab estimate
    bt = B if B * bytes_per_item <= (8 << 20) else 1
    if B % bt != 0:
        bt = 1
    nsteps = B // bt

    # Size the scoped VMEM limit to the actual working set (v5e default is 16 MiB).
    vmem_limit = int(min(64 << 20,
                         max(16 << 20,
                             8 * bt * C * HWp * 4 + 8 * C * C * 4 + (1 << 20))))

    kernel = partial(cross_transformer_kernel, hw_valid=HW)
    out = pl.pallas_call(
        kernel,
        out_shape=jax.ShapeDtypeStruct((B, C, HWp), jnp.float32),
        grid=(nsteps,),
        in_specs=[
            pl.BlockSpec((bt, C, HWp), lambda g: (g, 0, 0)),   # x1
            pl.BlockSpec((bt, C, HWp), lambda g: (g, 0, 0)),   # x2
            pl.BlockSpec((C, C), lambda g: (0, 0)),            # Wq
            pl.BlockSpec((2 * C, C), lambda g: (0, 0)),        # [Wk; Wv]
            pl.BlockSpec((C, C), lambda g: (0, 0)),            # Wproj
            pl.BlockSpec((C, 1), lambda g: (0, 0)),            # LN1 weight
            pl.BlockSpec((C, 1), lambda g: (0, 0)),            # LN1 bias
            pl.BlockSpec((C, 1), lambda g: (0, 0)),            # LN2 weight
            pl.BlockSpec((C, 1), lambda g: (0, 0)),            # LN2 bias
            pl.BlockSpec((C, 1), lambda g: (0, 0)),            # temperature (row)
            pl.BlockSpec((C, C), lambda g: (0, 0)),            # head mask bias
        ],
        out_specs=pl.BlockSpec((bt, C, HWp), lambda g: (g, 0, 0)),
        compiler_params=pltpu.CompilerParams(
            dimension_semantics=("parallel",),
            vmem_limit_bytes=vmem_limit),
    )(x1, x2, params["wq"], wkv, params["wp"],
      ln1w, ln1b, ln2w, ln2b, temp_col, head_bias)

    if HWp != HW:
        out = out[:, :, :HW]
    return out.reshape(B, C, H, W)


def reference(x1, x2, params, num_heads):
    """Pure-JAX mirror of the PyTorch CrossTransformer forward (NCHW)."""
    B, C, H, W = x1.shape
    HW = H * W

    def layer_norm(x, w, b):
        xt = jnp.transpose(x, (0, 2, 3, 1)).reshape(B, HW, C)
        mu = xt.mean(-1, keepdims=True)
        var = ((xt - mu) ** 2).mean(-1, keepdims=True)
        xn = (xt - mu) / jnp.sqrt(var + 1e-5) * w + b
        return jnp.transpose(xn.reshape(B, H, W, C), (0, 3, 1, 2))

    xn1 = layer_norm(x1, params["ln1_weight"], params["ln1_bias"])
    xn2 = layer_norm(x2, params["ln2_weight"], params["ln2_bias"])

    def conv1x1(z, w):
        return jnp.einsum("bchw,oc->bohw", z, w)

    q = conv1x1(xn1, params["wq"])
    k = conv1x1(xn2, params["wk"])
    v = conv1x1(xn2, params["wv"])
    CH = C // num_heads

    def rh(t):
        return t.reshape(B, num_heads, CH, HW)

    q, k, v = rh(q), rh(k), rh(v)

    def l2n(t):
        return t / jnp.maximum(
            jnp.sqrt(jnp.sum(t * t, axis=-1, keepdims=True)), 1e-12)

    q, k = l2n(q), l2n(k)
    attn = jnp.einsum("bhck,bhdk->bhcd", q, k)
    attn = attn * params["temperature"].reshape(1, num_heads, 1, 1)
    attn = jax.nn.softmax(attn, axis=-1)
    out = jnp.einsum("bhcd,bhdk->bhck", attn, v).reshape(B, C, H, W)
    out = conv1x1(out, params["wp"])
    return x1 + out


if __name__ == "__main__":
    B, C, H, W = 2, 24, 8, 8
    NUM_HEADS = 6

    key = jax.random.PRNGKey(0)
    (k_x1, k_x2, k_q, k_k, k_v, k_p,
     k_l1w, k_l1b, k_l2w, k_l2b, k_t) = jax.random.split(key, 11)

    scale = 1.0 / (C ** 0.5)
    params = {
        # Conv2d 1x1 weights stored as (out_channels, in_channels); bias=False.
        "wq": jax.random.normal(k_q, (C, C), jnp.float32) * scale,
        "wk": jax.random.normal(k_k, (C, C), jnp.float32) * scale,
        "wv": jax.random.normal(k_v, (C, C), jnp.float32) * scale,
        "wp": jax.random.normal(k_p, (C, C), jnp.float32) * scale,
        # WithBias LayerNorms (norm1 for x1, norm2 for x2); perturbed so the
        # affine paths are exercised.
        "ln1_weight": 1.0 + 0.1 * jax.random.normal(k_l1w, (C,), jnp.float32),
        "ln1_bias": 0.1 * jax.random.normal(k_l1b, (C,), jnp.float32),
        "ln2_weight": 1.0 + 0.1 * jax.random.normal(k_l2w, (C,), jnp.float32),
        "ln2_bias": 0.1 * jax.random.normal(k_l2b, (C,), jnp.float32),
        # temperature: nn.Parameter(torch.ones(num_heads, 1, 1)), perturbed.
        "temperature": 1.0 + 0.1 * jax.random.normal(k_t, (NUM_HEADS,), jnp.float32),
    }

    x1 = jax.random.normal(k_x1, (B, C, H, W), jnp.float32)
    x2 = jax.random.normal(k_x2, (B, C, H, W), jnp.float32)

    out = cross_transformer(x1, x2, params, NUM_HEADS)
    out = jax.block_until_ready(out)

    ref = reference(x1, x2, params, NUM_HEADS)
    assert out.shape == (B, C, H, W)
    assert jnp.allclose(out, ref, atol=1e-4, rtol=1e-4), (
        f"max abs err = {jnp.max(jnp.abs(out - ref))}")

    print("KERNEL_OK")
</pallas_src>

<mosaic_0001>
module attributes {stable_mosaic.version = 11 : i64} {
  func.func @cross_transformer_kernel(%arg0: i32, %arg1: memref<2x24x128xf32, #tpu.memory_space<vmem>>, %arg2: memref<2x24x128xf32, #tpu.memory_space<vmem>>, %arg3: memref<24x24xf32, #tpu.memory_space<vmem>>, %arg4: memref<48x24xf32, #tpu.memory_space<vmem>>, %arg5: memref<24x24xf32, #tpu.memory_space<vmem>>, %arg6: memref<24x1xf32, #tpu.memory_space<vmem>>, %arg7: memref<24x1xf32, #tpu.memory_space<vmem>>, %arg8: memref<24x1xf32, #tpu.memory_space<vmem>>, %arg9: memref<24x1xf32, #tpu.memory_space<vmem>>, %arg10: memref<24x1xf32, #tpu.memory_space<vmem>>, %arg11: memref<24x24xf32, #tpu.memory_space<vmem>>, %arg12: memref<2x24x128xf32, #tpu.memory_space<vmem>>) attributes {dimension_semantics = [#tpu.dimension_semantics<parallel>], iteration_bounds = array<i64: 1>, scalar_prefetch = 0 : i64, scratch_operands = 0 : i64, tpu.core_type = #tpu.core_type<tc>, window_params = [{transform_indices = @transform_0, window_bounds = array<i64: 2, 24, 128>}, {transform_indices = @transform_1, window_bounds = array<i64: 2, 24, 128>}, {pipeline_mode = #tpu.pipeline_mode<synchronous>, transform_indices = @transform_2, window_bounds = array<i64: 24, 24>}, {pipeline_mode = #tpu.pipeline_mode<synchronous>, transform_indices = @transform_3, window_bounds = array<i64: 48, 24>}, {pipeline_mode = #tpu.pipeline_mode<synchronous>, transform_indices = @transform_4, window_bounds = array<i64: 24, 24>}, {pipeline_mode = #tpu.pipeline_mode<synchronous>, transform_indices = @transform_5, window_bounds = array<i64: 24, 1>}, {pipeline_mode = #tpu.pipeline_mode<synchronous>, transform_indices = @transform_6, window_bounds = array<i64: 24, 1>}, {pipeline_mode = #tpu.pipeline_mode<synchronous>, transform_indices = @transform_7, window_bounds = array<i64: 24, 1>}, {pipeline_mode = #tpu.pipeline_mode<synchronous>, transform_indices = @transform_8, window_bounds = array<i64: 24, 1>}, {pipeline_mode = #tpu.pipeline_mode<synchronous>, transform_indices = @transform_9, window_bounds = array<i64: 24, 1>}, {pipeline_mode = #tpu.pipeline_mode<synchronous>, transform_indices = @transform_10, window_bounds = array<i64: 24, 24>}, {transform_indices = @transform_11, window_bounds = array<i64: 2, 24, 128>}]} {
    %c0 = arith.constant 0 : index
    %c0_0 = arith.constant 0 : index
    %0 = vector.load %arg3[%c0, %c0_0] : memref<24x24xf32, #tpu.memory_space<vmem>>, vector<24x24xf32>
    %c0_1 = arith.constant 0 : index
    %c0_2 = arith.constant 0 : index
    %1 = vector.load %arg4[%c0_1, %c0_2] : memref<48x24xf32, #tpu.memory_space<vmem>>, vector<48x24xf32>
    %c0_3 = arith.constant 0 : index
    %c0_4 = arith.constant 0 : index
    %2 = vector.load %arg5[%c0_3, %c0_4] : memref<24x24xf32, #tpu.memory_space<vmem>>, vector<24x24xf32>
    %c0_5 = arith.constant 0 : index
    %c0_6 = arith.constant 0 : index
    %3 = vector.load %arg6[%c0_5, %c0_6] : memref<24x1xf32, #tpu.memory_space<vmem>>, vector<24x1xf32>
    %c0_7 = arith.constant 0 : index
    %c0_8 = arith.constant 0 : index
    %4 = vector.load %arg7[%c0_7, %c0_8] : memref<24x1xf32, #tpu.memory_space<vmem>>, vector<24x1xf32>
    %c0_9 = arith.constant 0 : index
    %c0_10 = arith.constant 0 : index
    %5 = vector.load %arg8[%c0_9, %c0_10] : memref<24x1xf32, #tpu.memory_space<vmem>>, vector<24x1xf32>
    %c0_11 = arith.constant 0 : index
    %c0_12 = arith.constant 0 : index
    %6 = vector.load %arg9[%c0_11, %c0_12] : memref<24x1xf32, #tpu.memory_space<vmem>>, vector<24x1xf32>
    %c0_13 = arith.constant 0 : index
    %c0_14 = arith.constant 0 : index
    %7 = vector.load %arg10[%c0_13, %c0_14] : memref<24x1xf32, #tpu.memory_space<vmem>>, vector<24x1xf32>
    %c0_15 = arith.constant 0 : index
    %c0_16 = arith.constant 0 : index
    %8 = vector.load %arg11[%c0_15, %c0_16] : memref<24x24xf32, #tpu.memory_space<vmem>>, vector<24x24xf32>
    %9 = tpu.iota {dimensions = array<i32: 1>} : vector<1x128xi32>
    %c64_i32 = arith.constant 64 : i32
    %10 = vector.broadcast %c64_i32 : i32 to vector<1x128xi32>
    %11 = arith.cmpi slt, %9, %10 : vector<1x128xi32>
    %12 = arith.extui %11 : vector<1x128xi1> to vector<1x128xi32>
    %13 = arith.sitofp %12 : vector<1x128xi32> to vector<1x128xf32>
    %c0_17 = arith.constant 0 : index
    %c0_18 = arith.constant 0 : index
    %c0_19 = arith.constant 0 : index
    %14 = vector.load %arg1[%c0_17, %c0_18, %c0_19] : memref<2x24x128xf32, #tpu.memory_space<vmem>>, vector<1x24x128xf32>
    %15 = vector.shape_cast %14 : vector<1x24x128xf32> to vector<24x128xf32>
    %c0_20 = arith.constant 0 : index
    %c0_21 = arith.constant 0 : index
    %c0_22 = arith.constant 0 : index
    %16 = vector.load %arg2[%c0_20, %c0_21, %c0_22] : memref<2x24x128xf32, #tpu.memory_space<vmem>>, vector<1x24x128xf32>
    %17 = vector.shape_cast %16 : vector<1x24x128xf32> to vector<24x128xf32>
    %cst = arith.constant dense<0.000000e+00> : vector<128xf32>
    %18 = vector.multi_reduction <add>, %15, %cst [0] : vector<24x128xf32> to vector<128xf32>
    %19 = vector.shape_cast %18 : vector<128xf32> to vector<1x128xf32>
    %cst_23 = arith.constant 2.400000e+01 : f32
    %20 = vector.broadcast %cst_23 : f32 to vector<1x128xf32>
    %21 = arith.divf %19, %20 : vector<1x128xf32>
    %22 = vector.broadcast %21 : vector<1x128xf32> to vector<24x128xf32>
    %23 = arith.subf %15, %22 : vector<24x128xf32>
    %24 = arith.mulf %23, %23 : vector<24x128xf32>
    %cst_24 = arith.constant dense<0.000000e+00> : vector<128xf32>
    %25 = vector.multi_reduction <add>, %24, %cst_24 [0] : vector<24x128xf32> to vector<128xf32>
    %26 = vector.shape_cast %25 : vector<128xf32> to vector<1x128xf32>
    %cst_25 = arith.constant 2.400000e+01 : f32
    %27 = vector.broadcast %cst_25 : f32 to vector<1x128xf32>
    %28 = arith.divf %26, %27 : vector<1x128xf32>
    %cst_26 = arith.constant 9.99999974E-6 : f32
    %29 = vector.broadcast %cst_26 : f32 to vector<1x128xf32>
    %30 = arith.addf %28, %29 : vector<1x128xf32>
    %31 = math.rsqrt %30 : vector<1x128xf32>
    %32 = vector.broadcast %31 : vector<1x128xf32> to vector<24x128xf32>
    %33 = arith.mulf %23, %32 : vector<24x128xf32>
    %34 = vector.broadcast %3 : vector<24x1xf32> to vector<24x128xf32>
    %35 = arith.mulf %33, %34 : vector<24x128xf32>
    %36 = vector.broadcast %4 : vector<24x1xf32> to vector<24x128xf32>
    %37 = arith.addf %35, %36 : vector<24x128xf32>
    %38 = vector.broadcast %13 : vector<1x128xf32> to vector<24x128xf32>
    %39 = arith.mulf %37, %38 : vector<24x128xf32>
    %cst_27 = arith.constant dense<0.000000e+00> : vector<128xf32>
    %40 = vector.multi_reduction <add>, %17, %cst_27 [0] : vector<24x128xf32> to vector<128xf32>
    %41 = vector.shape_cast %40 : vector<128xf32> to vector<1x128xf32>
    %cst_28 = arith.constant 2.400000e+01 : f32
    %42 = vector.broadcast %cst_28 : f32 to vector<1x128xf32>
    %43 = arith.divf %41, %42 : vector<1x128xf32>
    %44 = vector.broadcast %43 : vector<1x128xf32> to vector<24x128xf32>
    %45 = arith.subf %17, %44 : vector<24x128xf32>
    %46 = arith.mulf %45, %45 : vector<24x128xf32>
    %cst_29 = arith.constant dense<0.000000e+00> : vector<128xf32>
    %47 = vector.multi_reduction <add>, %46, %cst_29 [0] : vector<24x128xf32> to vector<128xf32>
    %48 = vector.shape_cast %47 : vector<128xf32> to vector<1x128xf32>
    %cst_30 = arith.constant 2.400000e+01 : f32
    %49 = vector.broadcast %cst_30 : f32 to vector<1x128xf32>
    %50 = arith.divf %48, %49 : vector<1x128xf32>
    %cst_31 = arith.constant 9.99999974E-6 : f32
    %51 = vector.broadcast %cst_31 : f32 to vector<1x128xf32>
    %52 = arith.addf %50, %51 : vector<1x128xf32>
    %53 = math.rsqrt %52 : vector<1x128xf32>
    %54 = vector.broadcast %53 : vector<1x128xf32> to vector<24x128xf32>
    %55 = arith.mulf %45, %54 : vector<24x128xf32>
    %56 = vector.broadcast %5 : vector<24x1xf32> to vector<24x128xf32>
    %57 = arith.mulf %55, %56 : vector<24x128xf32>
    %58 = vector.broadcast %6 : vector<24x1xf32> to vector<24x128xf32>
    %59 = arith.addf %57, %58 : vector<24x128xf32>
    %60 = vector.broadcast %13 : vector<1x128xf32> to vector<24x128xf32>
    %61 = arith.mulf %59, %60 : vector<24x128xf32>
    %cst_32 = arith.constant dense<0.000000e+00> : vector<24x128xf32>
    %62 = tpu.matmul %0, %39, %cst_32 {dimension_numbers = #tpu.dot_dimension_numbers<[1], [0], [0], [1], [0, 0, 1, 1], [], []>} : vector<24x24xf32>, vector<24x128xf32>, vector<24x128xf32> -> vector<24x128xf32>
    %cst_33 = arith.constant dense<0.000000e+00> : vector<48x128xf32>
    %63 = tpu.matmul %1, %61, %cst_33 {dimension_numbers = #tpu.dot_dimension_numbers<[1], [0], [0], [1], [0, 0, 1, 1], [], []>} : vector<48x24xf32>, vector<24x128xf32>, vector<48x128xf32> -> vector<48x128xf32>
    %64 = vector.extract_strided_slice %63 {offsets = [0, 0], sizes = [24, 128], strides = [1, 1]} : vector<48x128xf32> to vector<24x128xf32>
    %65 = vector.extract_strided_slice %63 {offsets = [24, 0], sizes = [24, 128], strides = [1, 1]} : vector<48x128xf32> to vector<24x128xf32>
    %66 = arith.mulf %62, %62 : vector<24x128xf32>
    %cst_34 = arith.constant dense<0.000000e+00> : vector<24xf32>
    %67 = vector.multi_reduction <add>, %66, %cst_34 [1] : vector<24x128xf32> to vector<24xf32>
    %68 = vector.shape_cast %67 : vector<24xf32> to vector<24x1xf32>
    %69 = math.sqrt %68 : vector<24x1xf32>
    %70 = arith.mulf %64, %64 : vector<24x128xf32>
    %cst_35 = arith.constant dense<0.000000e+00> : vector<24xf32>
    %71 = vector.multi_reduction <add>, %70, %cst_35 [1] : vector<24x128xf32> to vector<24xf32>
    %72 = vector.shape_cast %71 : vector<24xf32> to vector<24x1xf32>
    %73 = math.sqrt %72 : vector<24x1xf32>
    %cst_36 = arith.constant 9.99999996E-13 : f32
    %74 = vector.broadcast %cst_36 : f32 to vector<24x1xf32>
    %75 = arith.maximumf %69, %74 : vector<24x1xf32>
    %76 = arith.divf %7, %75 : vector<24x1xf32>
    %cst_37 = arith.constant 9.99999996E-13 : f32
    %77 = vector.broadcast %cst_37 : f32 to vector<24x1xf32>
    %78 = arith.maximumf %73, %77 : vector<24x1xf32>
    %cst_38 = arith.constant 1.000000e+00 : f32
    %79 = vector.broadcast %cst_38 : f32 to vector<24x1xf32>
    %80 = arith.divf %79, %78 : vector<24x1xf32>
    %81 = vector.broadcast %80 : vector<24x1xf32> to vector<24x128xf32>
    %82 = arith.mulf %64, %81 : vector<24x128xf32>
    %cst_39 = arith.constant dense<0.000000e+00> : vector<24x24xf32>
    %83 = tpu.matmul %62, %82, %cst_39 {dimension_numbers = #tpu.dot_dimension_numbers<[1], [1], [0], [0], [0, 0, 1, 0], [], []>} : vector<24x128xf32>, vector<24x128xf32>, vector<24x24xf32> -> vector<24x24xf32>
    %84 = vector.broadcast %76 : vector<24x1xf32> to vector<24x24xf32>
    %85 = arith.mulf %83, %84 : vector<24x24xf32>
    %86 = arith.addf %85, %8 : vector<24x24xf32>
    %cst_40 = arith.constant dense<0xFF800000> : vector<24xf32>
    %87 = vector.multi_reduction <maximumf>, %86, %cst_40 [1] : vector<24x24xf32> to vector<24xf32>
    %88 = vector.shape_cast %87 : vector<24xf32> to vector<24x1xf32>
    %89 = vector.broadcast %88 : vector<24x1xf32> to vector<24x24xf32>
    %90 = arith.subf %86, %89 : vector<24x24xf32>
    %91 = math.exp %90 : vector<24x24xf32>
    %cst_41 = arith.constant dense<0.000000e+00> : vector<24xf32>
    %92 = vector.multi_reduction <add>, %91, %cst_41 [1] : vector<24x24xf32> to vector<24xf32>
    %93 = vector.shape_cast %92 : vector<24xf32> to vector<24x1xf32>
    %94 = tpu.reciprocal %93 {approx = true} : vector<24x1xf32> -> vector<24x1xf32>
    %95 = arith.mulf %93, %94 : vector<24x1xf32>
    %cst_42 = arith.constant 2.000000e+00 : f32
    %96 = vector.broadcast %cst_42 : f32 to vector<24x1xf32>
    %97 = arith.subf %96, %95 : vector<24x1xf32>
    %98 = arith.mulf %94, %97 : vector<24x1xf32>
    %99 = vector.broadcast %98 : vector<24x1xf32> to vector<24x24xf32>
    %100 = arith.mulf %91, %99 : vector<24x24xf32>
    %cst_43 = arith.constant dense<0.000000e+00> : vector<24x24xf32>
    %101 = tpu.matmul %2, %100, %cst_43 {dimension_numbers = #tpu.dot_dimension_numbers<[1], [0], [0], [1], [0, 0, 1, 1], [], []>} : vector<24x24xf32>, vector<24x24xf32>, vector<24x24xf32> -> vector<24x24xf32>
    %cst_44 = arith.constant dense<0.000000e+00> : vector<24x128xf32>
    %102 = tpu.matmul %101, %65, %cst_44 {dimension_numbers = #tpu.dot_dimension_numbers<[1], [0], [0], [1], [0, 0, 1, 1], [], []>} : vector<24x24xf32>, vector<24x128xf32>, vector<24x128xf32> -> vector<24x128xf32>
    %103 = arith.addf %15, %102 : vector<24x128xf32>
    %c0_45 = arith.constant 0 : index
    %c0_46 = arith.constant 0 : index
    %c0_47 = arith.constant 0 : index
    %104 = vector.load %arg12[%c0_45, %c0_46, %c0_47] : memref<2x24x128xf32, #tpu.memory_space<vmem>>, vector<1x24x128xf32>
    %105 = vector.shape_cast %104 : vector<1x24x128xf32> to vector<24x128xf32>
    %106 = vector.shape_cast %103 : vector<24x128xf32> to vector<1x24x128xf32>
    tpu.vector_store %arg12[%c0_45, %c0_46, %c0_47], %106 {strides = array<i32>} : memref<2x24x128xf32, #tpu.memory_space<vmem>>, vector<1x24x128xf32>,
    %c1 = arith.constant 1 : index
    %c0_48 = arith.constant 0 : index
    %c0_49 = arith.constant 0 : index
    %107 = vector.load %arg1[%c1, %c0_48, %c0_49] : memref<2x24x128xf32, #tpu.memory_space<vmem>>, vector<1x24x128xf32>
    %108 = vector.shape_cast %107 : vector<1x24x128xf32> to vector<24x128xf32>
    %c1_50 = arith.constant 1 : index
    %c0_51 = arith.constant 0 : index
    %c0_52 = arith.constant 0 : index
    %109 = vector.load %arg2[%c1_50, %c0_51, %c0_52] : memref<2x24x128xf32, #tpu.memory_space<vmem>>, vector<1x24x128xf32>
    %110 = vector.shape_cast %109 : vector<1x24x128xf32> to vector<24x128xf32>
    %cst_53 = arith.constant dense<0.000000e+00> : vector<128xf32>
    %111 = vector.multi_reduction <add>, %108, %cst_53 [0] : vector<24x128xf32> to vector<128xf32>
    %112 = vector.shape_cast %111 : vector<128xf32> to vector<1x128xf32>
    %cst_54 = arith.constant 2.400000e+01 : f32
    %113 = vector.broadcast %cst_54 : f32 to vector<1x128xf32>
    %114 = arith.divf %112, %113 : vector<1x128xf32>
    %115 = vector.broadcast %114 : vector<1x128xf32> to vector<24x128xf32>
    %116 = arith.subf %108, %115 : vector<24x128xf32>
    %117 = arith.mulf %116, %116 : vector<24x128xf32>
    %cst_55 = arith.constant dense<0.000000e+00> : vector<128xf32>
    %118 = vector.multi_reduction <add>, %117, %cst_55 [0] : vector<24x128xf32> to vector<128xf32>
    %119 = vector.shape_cast %118 : vector<128xf32> to vector<1x128xf32>
    %cst_56 = arith.constant 2.400000e+01 : f32
    %120 = vector.broadcast %cst_56 : f32 to vector<1x128xf32>
    %121 = arith.divf %119, %120 : vector<1x128xf32>
    %cst_57 = arith.constant 9.99999974E-6 : f32
    %122 = vector.broadcast %cst_57 : f32 to vector<1x128xf32>
    %123 = arith.addf %121, %122 : vector<1x128xf32>
    %124 = math.rsqrt %123 : vector<1x128xf32>
    %125 = vector.broadcast %124 : vector<1x128xf32> to vector<24x128xf32>
    %126 = arith.mulf %116, %125 : vector<24x128xf32>
    %127 = vector.broadcast %3 : vector<24x1xf32> to vector<24x128xf32>
    %128 = arith.mulf %126, %127 : vector<24x128xf32>
    %129 = vector.broadcast %4 : vector<24x1xf32> to vector<24x128xf32>
    %130 = arith.addf %128, %129 : vector<24x128xf32>
    %131 = vector.broadcast %13 : vector<1x128xf32> to vector<24x128xf32>
    %132 = arith.mulf %130, %131 : vector<24x128xf32>
    %cst_58 = arith.constant dense<0.000000e+00> : vector<128xf32>
    %133 = vector.multi_reduction <add>, %110, %cst_58 [0] : vector<24x128xf32> to vector<128xf32>
    %134 = vector.shape_cast %133 : vector<128xf32> to vector<1x128xf32>
    %cst_59 = arith.constant 2.400000e+01 : f32
    %135 = vector.broadcast %cst_59 : f32 to vector<1x128xf32>
    %136 = arith.divf %134, %135 : vector<1x128xf32>
    %137 = vector.broadcast %136 : vector<1x128xf32> to vector<24x128xf32>
    %138 = arith.subf %110, %137 : vector<24x128xf32>
    %139 = arith.mulf %138, %138 : vector<24x128xf32>
    %cst_60 = arith.constant dense<0.000000e+00> : vector<128xf32>
    %140 = vector.multi_reduction <add>, %139, %cst_60 [0] : vector<24x128xf32> to vector<128xf32>
    %141 = vector.shape_cast %140 : vector<128xf32> to vector<1x128xf32>
    %cst_61 = arith.constant 2.400000e+01 : f32
    %142 = vector.broadcast %cst_61 : f32 to vector<1x128xf32>
    %143 = arith.divf %141, %142 : vector<1x128xf32>
    %cst_62 = arith.constant 9.99999974E-6 : f32
    %144 = vector.broadcast %cst_62 : f32 to vector<1x128xf32>
    %145 = arith.addf %143, %144 : vector<1x128xf32>
    %146 = math.rsqrt %145 : vector<1x128xf32>
    %147 = vector.broadcast %146 : vector<1x128xf32> to vector<24x128xf32>
    %148 = arith.mulf %138, %147 : vector<24x128xf32>
    %149 = vector.broadcast %5 : vector<24x1xf32> to vector<24x128xf32>
    %150 = arith.mulf %148, %149 : vector<24x128xf32>
    %151 = vector.broadcast %6 : vector<24x1xf32> to vector<24x128xf32>
    %152 = arith.addf %150, %151 : vector<24x128xf32>
    %153 = vector.broadcast %13 : vector<1x128xf32> to vector<24x128xf32>
    %154 = arith.mulf %152, %153 : vector<24x128xf32>
    %cst_63 = arith.constant dense<0.000000e+00> : vector<24x128xf32>
    %155 = tpu.matmul %0, %132, %cst_63 {dimension_numbers = #tpu.dot_dimension_numbers<[1], [0], [0], [1], [0, 0, 1, 1], [], []>} : vector<24x24xf32>, vector<24x128xf32>, vector<24x128xf32> -> vector<24x128xf32>
    %cst_64 = arith.constant dense<0.000000e+00> : vector<48x128xf32>
    %156 = tpu.matmul %1, %154, %cst_64 {dimension_numbers = #tpu.dot_dimension_numbers<[1], [0], [0], [1], [0, 0, 1, 1], [], []>} : vector<48x24xf32>, vector<24x128xf32>, vector<48x128xf32> -> vector<48x128xf32>
    %157 = vector.extract_strided_slice %156 {offsets = [0, 0], sizes = [24, 128], strides = [1, 1]} : vector<48x128xf32> to vector<24x128xf32>
    %158 = vector.extract_strided_slice %156 {offsets = [24, 0], sizes = [24, 128], strides = [1, 1]} : vector<48x128xf32> to vector<24x128xf32>
    %159 = arith.mulf %155, %155 : vector<24x128xf32>
    %cst_65 = arith.constant dense<0.000000e+00> : vector<24xf32>
    %160 = vector.multi_reduction <add>, %159, %cst_65 [1] : vector<24x128xf32> to vector<24xf32>
    %161 = vector.shape_cast %160 : vector<24xf32> to vector<24x1xf32>
    %162 = math.sqrt %161 : vector<24x1xf32>
    %163 = arith.mulf %157, %157 : vector<24x128xf32>
    %cst_66 = arith.constant dense<0.000000e+00> : vector<24xf32>
    %164 = vector.multi_reduction <add>, %163, %cst_66 [1] : vector<24x128xf32> to vector<24xf32>
    %165 = vector.shape_cast %164 : vector<24xf32> to vector<24x1xf32>
    %166 = math.sqrt %165 : vector<24x1xf32>
    %cst_67 = arith.constant 9.99999996E-13 : f32
    %167 = vector.broadcast %cst_67 : f32 to vector<24x1xf32>
    %168 = arith.maximumf %162, %167 : vector<24x1xf32>
    %169 = arith.divf %7, %168 : vector<24x1xf32>
    %cst_68 = arith.constant 9.99999996E-13 : f32
    %170 = vector.broadcast %cst_68 : f32 to vector<24x1xf32>
    %171 = arith.maximumf %166, %170 : vector<24x1xf32>
    %cst_69 = arith.constant 1.000000e+00 : f32
    %172 = vector.broadcast %cst_69 : f32 to vector<24x1xf32>
    %173 = arith.divf %172, %171 : vector<24x1xf32>
    %174 = vector.broadcast %173 : vector<24x1xf32> to vector<24x128xf32>
    %175 = arith.mulf %157, %174 : vector<24x128xf32>
    %cst_70 = arith.constant dense<0.000000e+00> : vector<24x24xf32>
    %176 = tpu.matmul %155, %175, %cst_70 {dimension_numbers = #tpu.dot_dimension_numbers<[1], [1], [0], [0], [0, 0, 1, 0], [], []>} : vector<24x128xf32>, vector<24x128xf32>, vector<24x24xf32> -> vector<24x24xf32>
    %177 = vector.broadcast %169 : vector<24x1xf32> to vector<24x24xf32>
    %178 = arith.mulf %176, %177 : vector<24x24xf32>
    %179 = arith.addf %178, %8 : vector<24x24xf32>
    %cst_71 = arith.constant dense<0xFF800000> : vector<24xf32>
    %180 = vector.multi_reduction <maximumf>, %179, %cst_71 [1] : vector<24x24xf32> to vector<24xf32>
    %181 = vector.shape_cast %180 : vector<24xf32> to vector<24x1xf32>
    %182 = vector.broadcast %181 : vector<24x1xf32> to vector<24x24xf32>
    %183 = arith.subf %179, %182 : vector<24x24xf32>
    %184 = math.exp %183 : vector<24x24xf32>
    %cst_72 = arith.constant dense<0.000000e+00> : vector<24xf32>
    %185 = vector.multi_reduction <add>, %184, %cst_72 [1] : vector<24x24xf32> to vector<24xf32>
    %186 = vector.shape_cast %185 : vector<24xf32> to vector<24x1xf32>
    %187 = tpu.reciprocal %186 {approx = true} : vector<24x1xf32> -> vector<24x1xf32>
    %188 = arith.mulf %186, %187 : vector<24x1xf32>
    %cst_73 = arith.constant 2.000000e+00 : f32
    %189 = vector.broadcast %cst_73 : f32 to vector<24x1xf32>
    %190 = arith.subf %189, %188 : vector<24x1xf32>
    %191 = arith.mulf %187, %190 : vector<24x1xf32>
    %192 = vector.broadcast %191 : vector<24x1xf32> to vector<24x24xf32>
    %193 = arith.mulf %184, %192 : vector<24x24xf32>
    %cst_74 = arith.constant dense<0.000000e+00> : vector<24x24xf32>
    %194 = tpu.matmul %2, %193, %cst_74 {dimension_numbers = #tpu.dot_dimension_numbers<[1], [0], [0], [1], [0, 0, 1, 1], [], []>} : vector<24x24xf32>, vector<24x24xf32>, vector<24x24xf32> -> vector<24x24xf32>
    %cst_75 = arith.constant dense<0.000000e+00> : vector<24x128xf32>
    %195 = tpu.matmul %194, %158, %cst_75 {dimension_numbers = #tpu.dot_dimension_numbers<[1], [0], [0], [1], [0, 0, 1, 1], [], []>} : vector<24x24xf32>, vector<24x128xf32>, vector<24x128xf32> -> vector<24x128xf32>
    %196 = arith.addf %108, %195 : vector<24x128xf32>
    %c1_76 = arith.constant 1 : index
    %c0_77 = arith.constant 0 : index
    %c0_78 = arith.constant 0 : index
    %197 = vector.load %arg12[%c1_76, %c0_77, %c0_78] : memref<2x24x128xf32, #tpu.memory_space<vmem>>, vector<1x24x128xf32>
    %198 = vector.shape_cast %197 : vector<1x24x128xf32> to vector<24x128xf32>
    %199 = vector.shape_cast %196 : vector<24x128xf32> to vector<1x24x128xf32>
    tpu.vector_store %arg12[%c1_76, %c0_77, %c0_78], %199 {strides = array<i32>} : memref<2x24x128xf32, #tpu.memory_space<vmem>>, vector<1x24x128xf32>,
    return
  }
  func.func @transform_0(%arg0: i32) -> (i32, i32, i32) {
    %c0_i32 = arith.constant 0 : i32
    %c0_i32_0 = arith.constant 0 : i32
    %c0_i32_1 = arith.constant 0 : i32
    return %arg0, %c0_i32, %c0_i32_0 : i32, i32, i32
  }
  func.func @transform_1(%arg0: i32) -> (i32, i32, i32) {
    %c0_i32 = arith.constant 0 : i32
    %c0_i32_0 = arith.constant 0 : i32
    %c0_i32_1 = arith.constant 0 : i32
    return %arg0, %c0_i32, %c0_i32_0 : i32, i32, i32
  }
  func.func @transform_2(%arg0: i32) -> (i32, i32) {
    %c0_i32 = arith.constant 0 : i32
    %c0_i32_0 = arith.constant 0 : i32
    %c0_i32_1 = arith.constant 0 : i32
    return %c0_i32, %c0_i32_0 : i32, i32
  }
  func.func @transform_3(%arg0: i32) -> (i32, i32) {
    %c0_i32 = arith.constant 0 : i32
    %c0_i32_0 = arith.constant 0 : i32
    %c0_i32_1 = arith.constant 0 : i32
    return %c0_i32, %c0_i32_0 : i32, i32
  }
  func.func @transform_4(%arg0: i32) -> (i32, i32) {
    %c0_i32 = arith.constant 0 : i32
    %c0_i32_0 = arith.constant 0 : i32
    %c0_i32_1 = arith.constant 0 : i32
    return %c0_i32, %c0_i32_0 : i32, i32
  }
  func.func @transform_5(%arg0: i32) -> (i32, i32) {
    %c0_i32 = arith.constant 0 : i32
    %c0_i32_0 = arith.constant 0 : i32
    %c0_i32_1 = arith.constant 0 : i32
    return %c0_i32, %c0_i32_0 : i32, i32
  }
  func.func @transform_6(%arg0: i32) -> (i32, i32) {
    %c0_i32 = arith.constant 0 : i32
    %c0_i32_0 = arith.constant 0 : i32
    %c0_i32_1 = arith.constant 0 : i32
    return %c0_i32, %c0_i32_0 : i32, i32
  }
  func.func @transform_7(%arg0: i32) -> (i32, i32) {
    %c0_i32 = arith.constant 0 : i32
    %c0_i32_0 = arith.constant 0 : i32
    %c0_i32_1 = arith.constant 0 : i32
    return %c0_i32, %c0_i32_0 : i32, i32
  }
  func.func @transform_8(%arg0: i32) -> (i32, i32) {
    %c0_i32 = arith.constant 0 : i32
    %c0_i32_0 = arith.constant 0 : i32
    %c0_i32_1 = arith.constant 0 : i32
    return %c0_i32, %c0_i32_0 : i32, i32
  }
  func.func @transform_9(%arg0: i32) -> (i32, i32) {
    %c0_i32 = arith.constant 0 : i32
    %c0_i32_0 = arith.constant 0 : i32
    %c0_i32_1 = arith.constant 0 : i32
    return %c0_i32, %c0_i32_0 : i32, i32
  }
  func.func @transform_10(%arg0: i32) -> (i32, i32) {
    %c0_i32 = arith.constant 0 : i32
    %c0_i32_0 = arith.constant 0 : i32
    %c0_i32_1 = arith.constant 0 : i32
    return %c0_i32, %c0_i32_0 : i32, i32
  }
  func.func @transform_11(%arg0: i32) -> (i32, i32, i32) {
    %c0_i32 = arith.constant 0 : i32
    %c0_i32_0 = arith.constant 0 : i32
    %c0_i32_1 = arith.constant 0 : i32
    return %arg0, %c0_i32, %c0_i32_0 : i32, i32, i32
  }
}

</mosaic_0001>

<bundles_post_ra>
// kernel: tpu_custom_call.1
= control target key start
LH: loop header
LB: loop body
LE: loop exit
PB: predicated region body
PF: predicated region fallthrough
CT: control target
= control target key end

     0   :  { %v1904_v2 = vmov 0   ;;  %s2504_s0 = inlined_call_operand.vmem [shape: f32[2,24,128], index: 0, kind: input, shape index: {}]   ;;  %s2505_s1 = inlined_call_operand.vmem [shape: f32[2,24,128], index: 1, kind: input, shape index: {}]   ;;  %s2506_s2 = inlined_call_operand.vmem [shape: f32[24,24], index: 2, kind: input, shape index: {}]   ;;  %s2507_s3 = inlined_call_operand.vmem [shape: f32[48,24], index: 3, kind: input, shape index: {}]   ;;  %s2508_s4 = inlined_call_operand.vmem [shape: f32[24,24], index: 4, kind: input, shape index: {}]   ;;  %s2509_s5 = inlined_call_operand.vmem [shape: f32[24,1], index: 5, kind: input, shape index: {}]   ;;  %s2510_s6 = inlined_call_operand.vmem [shape: f32[24,1], index: 6, kind: input, shape index: {}]   ;;  %s2511_s7 = inlined_call_operand.vmem [shape: f32[24,1], index: 7, kind: input, shape index: {}]   ;;  %s2512_s8 = inlined_call_operand.vmem [shape: f32[24,1], index: 8, kind: input, shape index: {}]   ;;  %s2513_s9 = inlined_call_operand.vmem [shape: f32[24,1], index: 9, kind: input, shape index: {}]   ;;  %s2514_s10 = inlined_call_operand.vmem [shape: f32[24,24], index: 10, kind: input, shape index: {}]   ;;  %s2515_s11 = inlined_call_operand.hbm [shape: f32[2,24,128], index: 11, kind: output, shape index: {}]  }
   0x1   :  { %v60_v0 = vld [vmem:[%s2512_s8] sm:$0xff]  ;;  %1796 = vset.pattern.permute.xlu1 %v1904_v2  ;;  %1795 = vset.pattern.permute.xlu0 %v1904_v2  ;;  %v61_v3 = vld [vmem:[%s2512_s8 + $0x8] sm:$0xff]  ;;  %v1522_v5 = vld [vmem:[%s2505_s1 + $0x18] sm:$0xff] }
   0x2   :  { %v57_v1 = vld [vmem:[%s2511_s7] sm:$0xff]  ;;  %198 = vperm.xlu1 %1796, %v60_v0   ;;  %v58_v4 = vld [vmem:[%s2511_s7 + $0x8] sm:$0xff]  ;;  %v62_v9 = vld [vmem:[%s2512_s8 + $0x10] sm:$0xff] }
   0x3   :  { %180 = vperm.xlu0 %1795, %v57_v1   ;;  %v1523_v6 = vld [vmem:[%s2505_s1 + $0x20] sm:$0xff]  ;;  %v1524_v7 = vld [vmem:[%s2505_s1 + $0x28] sm:$0xff]  ;;  %v59_v10 = vld [vmem:[%s2511_s7 + $0x10] sm:$0xff] }
   0x4   :  { %v874_v8 = vadd.f32 %v1523_v6, %v1522_v5 }
   0x6   :  { %203 = vperm.xlu1 %1796, %v61_v3   ;;  %v875_v11 = vadd.f32 %v1524_v7, %v874_v8 }
   0x7   :  { %185 = vperm.xlu0 %1795, %v58_v4  }
   0x8   :  { %16 = vsyncpa [#allocation3], 0  ;;  %v876_v12 = vrot.slane %v875_v11, 4  ;;  %v52_v13 = vld [vmem:[%s2509_s5 + $0x8] sm:$0xff]  ;;  %v51_v14 = vld [vmem:[%s2509_s5] sm:$0xff]  ;;  %vm217_vm0 = vcmask 195584  }
   0x9   :  { %v55_v17 = vld [vmem:[%s2510_s6 + $0x8] sm:$0xff]  ;;  %v54_v18 = vld [vmem:[%s2510_s6] sm:$0xff]  ;;  %v56_v21 = vld [vmem:[%s2510_s6 + $0x10] sm:$0xff]  ;;  %v1905_v38 = vmov 0.0|0.0   ;;  %vm1906_vm1 = vmmov 0   ;;  %v1907_v40 = vmov 0.0  }
   0xa   :  { %208 = vperm.xlu1 %1796, %v62_v9   ;;  %v877_v15 = vadd.f32 %v876_v12, %v875_v11  ;;  %v53_v22 = vld [vmem:[%s2509_s5 + $0x10] sm:$0xff]  ;;  %v2019_v23 = vld [vmem:[%s2507_s3] sm:$0xff]  ;;  %v78_v30 = vld [vmem:[%s2505_s1 + $0x8] sm:$0xff]  ;;  %1756 = vmatprep.subr.bf16.mxu0 %v1905_v38  ;;  %s1908_s29 = smov [#allocation2]  }
   0xb   :  { %190 = vperm.xlu0 %1795, %v59_v10   ;;  %1627 = vmatprep.mubr.msk.f32.mxu1 %vm217_vm0, %v2019_v23  ;;  %v77_v29 = vld [vmem:[%s2505_s1] sm:$0xff]  ;;  %v79_v36 = vld [vmem:[%s2505_s1 + $0x10] sm:$0xff]  ;;  %v2051_v47 = vld [vmem:[%s2504_s0 + $0x8] sm:$0xff]  ;;  %s1492_s30 = sshll.u32 %s1908_s29, 4  ;;  %s1493_s30 = int_to_ptr.vmem [resolvable:$true] %s1492_s30 }
   0xc   :  { %v878_v16 = vrot.slane %v877_v15, 2  ;;  %v149_v35 = vadd.f32 %v78_v30, %v77_v29  ;;  %1612 = vmatprep.mubr.msk.f32.mxu0 %vm1906_vm1, %v1907_v40  ;;  %v2046_v46 = vld [vmem:[%s2504_s0] sm:$0xff]  ;;  %v1519_v48 = vld [vmem:[%s2504_s0 + $0x18] sm:$0xff]  ;;  %v2064_v54 = vld [vmem:[%s2504_s0 + $0x10] sm:$0xff]  ;;  %s1880_s13 = scalar_lea.vmem %s1493_s30, 768  ;;  %p1885_p1 = scmp.lt.s32.totalorder %s1493_s30, %s1493_s30 }
   0xd   :  { %v1520_v49 = vld [vmem:[%s2504_s0 + $0x20] sm:$0xff]  ;;  %v80_v52 = vadd.f32 %v2051_v47, %v2046_v46  ;;  %v1521_v56 = vld [vmem:[%s2504_s0 + $0x28] sm:$0xff]  ;;  %p1881_p0 = scmp.ne.s32.totalorder %s1493_s30, %s1880_s13  ;;  %p1886_p2 = scmp.lt.s32.totalorder %s1880_s13, %s1880_s13 }
   0xe   :  { %117 = vperm.xlu1 %1796, %v52_v13   ;;  %v879_v19 = vadd.f32 %v878_v16, %v877_v15  ;;  %v150_v41 = vadd.f32 %v149_v35, %v79_v36  ;;  %v836_v55 = vadd.f32 %v1520_v49, %v1519_v48 }
   0xf   :  { %112 = vperm.xlu0 %1795, %v51_v14   ;;  %v81_v59 = vadd.f32 %v80_v52, %v2064_v54  ;;  %p1887_p3 = por %p1886_p2, %p1885_p1 }
  0x10   :  { %v880_v20 = vrot.slane %v879_v19, 1  ;;  %v151_v44 = vrot.slane %v150_v41, 4  ;;  %v837_v61 = vadd.f32 %v1521_v56, %v836_v55 }
  0x11   :  { %v82_v63 = vrot.slane %v81_v59, 4  ;;  %p1888_p4 = pnand %p1887_p3, %p1881_p0 }
  0x12   :  { %135 = vperm.xlu1 %1796, %v55_v17   ;;  %v881_v24 = vadd.f32 %v880_v20, %v879_v19  ;;  %v152_v51 = vadd.f32 %v151_v44, %v150_v41  ;;  %v838_v0 = vrot.slane %v837_v61, 4 }
  0x13   :  { %130 = vperm.xlu0 %1795, %v54_v18   ;;  %v83_v2 = vadd.f32 %v82_v63, %v81_v59 }
  0x14   :  { %v882_v25 = vmul.f32 0.041666668, %v881_v24  ;;  %v153_v58 = vrot.slane %v152_v51, 2  ;;  %v839_v3 = vadd.f32 %v838_v0, %v837_v61 }
  0x16   :  { %140 = vperm.xlu1 %1796, %v56_v21   ;;  %v2023_v26 = vsub.f32 %v1522_v5, %v882_v25  ;;  %v2025_v27 = vsub.f32 %v1523_v6, %v882_v25  ;;  %v885_v28 = vsub.f32 %v1524_v7, %v882_v25  ;;  %v154_v62 = vadd.f32 %v153_v58, %v152_v51 }
  0x17   :  { %122 = vperm.xlu0 %1795, %v53_v22   ;;  %v84_v5 = vrot.slane %v83_v2, 2  ;;  %v840_v7 = vrot.slane %v839_v3, 2 }
  0x18   :  { %v886_v31 = vmul.f32 %v2023_v26, %v2023_v26  ;;  %v887_v32 = vmul.f32 %v2025_v27, %v2025_v27  ;;  %v888_v33 = vmul.f32 %v885_v28, %v885_v28  ;;  %v155_v1 = vrot.slane %v154_v62, 1 }
  0x19   :  { %v85_v10 = vadd.f32 %v84_v5, %v83_v2  ;;  %v841_v11 = vadd.f32 %v840_v7, %v839_v3 }
  0x1a   :  { %v889_v34 = vadd.f32 %v887_v32, %v886_v31  ;;  %v156_v4 = vadd.f32 %v155_v1, %v154_v62 }
  0x1b   :  { %v86_v14 = vrot.slane %v85_v10, 1  ;;  %v842_v15 = vrot.slane %v841_v11, 1 }
  0x1c   :  { %v890_v37 = vadd.f32 %v889_v34, %v888_v33  ;;  %v157_v9 = vmul.f32 0.041666668, %v156_v4 }
  0x1d   :  { %v87_v19 = vadd.f32 %v86_v14, %v85_v10  ;;  %v843_v20 = vadd.f32 %v842_v15, %v841_v11  ;;  %v69_v10 = vlaneseq }
  0x1e   :  { %v891_v39 = vrot.slane %v890_v37, 4  ;;  %v158_v12 = vsub.f32 %v77_v29, %v157_v9  ;;  %v2075_v13 = vsub.f32 %v78_v30, %v157_v9  ;;  %v2077_v16 = vsub.f32 %v79_v36, %v157_v9 }
  0x1f   :  { %v89_v24 = vmul.f32 0.041666668, %v87_v19  ;;  %v844_v25 = vmul.f32 0.041666668, %v843_v20 }
  0x20   :  { %v892_v42 = vadd.f32 %v891_v39, %v890_v37  ;;  %v161_v17 = vmul.f32 %v158_v12, %v158_v12  ;;  %v162_v18 = vmul.f32 %v2075_v13, %v2075_v13  ;;  %v163_v21 = vmul.f32 %v2077_v16, %v2077_v16 }
  0x21   :  { %v2084_v29 = vsub.f32 %v2046_v46, %v89_v24  ;;  %v2087_v30 = vsub.f32 %v2051_v47, %v89_v24  ;;  %v2089_v31 = vsub.f32 %v1519_v48, %v844_v25  ;;  %v2091_v32 = vsub.f32 %v1520_v49, %v844_v25 }
  0x22   :  { %v893_v43 = vrot.slane %v892_v42, 2  ;;  %v164_v22 = vadd.f32 %v162_v18, %v161_v17  ;;  %v2094_v34 = vsub.f32 %v2064_v54, %v89_v24  ;;  %v2100_v37 = vsub.f32 %v1521_v56, %v844_v25 }
  0x23   :  { %v93_v35 = vmul.f32 %v2084_v29, %v2084_v29  ;;  %v94_v36 = vmul.f32 %v2087_v30, %v2087_v30  ;;  %v848_v39 = vmul.f32 %v2089_v31, %v2089_v31  ;;  %v849_v41 = vmul.f32 %v2091_v32, %v2091_v32 }
  0x24   :  { %v894_v45 = vadd.f32 %v893_v43, %v892_v42  ;;  %v95_v43 = vmul.f32 %v2094_v34, %v2094_v34  ;;  %v70_v17 = vand.u32 127, %v69_v10 }
  0x25   :  { %v96_v44 = vadd.f32 %v94_v36, %v93_v35  ;;  %v851_v48 = vadd.f32 %v849_v41, %v848_v39 }
  0x26   :  { %v895_v50 = vrot.slane %v894_v45, 1  ;;  %vm71_vm2 = vcmp.lt.s32.totalorder %v70_v17, 64 }
  0x28   :  { %v896_v53 = vadd.f32 %v895_v50, %v894_v45  ;;  %v850_v45 = vmul.f32 %v2100_v37, %v2100_v37  ;;  %v97_v50 = vadd.f32 %v96_v44, %v95_v43 }
  0x2a   :  { %v897_v57 = vmul.f32 0.041666668, %v896_v53  ;;  %v852_v51 = vadd.f32 %v851_v48, %v850_v45  ;;  %v98_v53 = vrot.slane %v97_v50, 4 }
  0x2c   :  { %v898_v60 = vadd.f32 1e-05, %v897_v57  ;;  %v853_v55 = vrot.slane %v852_v51, 4  ;;  %v99_v57 = vadd.f32 %v98_v53, %v97_v50 }
  0x2e   :  { %1797 = vrsqrt.f32 %v898_v60  ;;  %v854_v58 = vadd.f32 %v853_v55, %v852_v51  ;;  %v100_v60 = vrot.slane %v99_v57, 2 }
  0x30   :  { %v855_v61 = vrot.slane %v854_v58, 2  ;;  %v101_v63 = vadd.f32 %v100_v60, %v99_v57 }
  0x32   :  { %v856_v0 = vadd.f32 %v855_v61, %v854_v58  ;;  %v102_v2 = vrot.slane %v101_v63, 1 }
  0x34   :  { %v857_v3 = vrot.slane %v856_v0, 1  ;;  %v103_v4 = vadd.f32 %v102_v2, %v101_v63 }
  0x36   :  { %v858_v5 = vadd.f32 %v857_v3, %v856_v0  ;;  %v104_v7 = vmul.f32 0.041666668, %v103_v4  ;;  %v2141_v3 = vld [vmem:[%s2507_s3 + $0x8] sm:$0xff] }
  0x38   :  { %v2070_v6 = vpop.eup %1797  ;;  %v859_v9 = vmul.f32 0.041666668, %v858_v5  ;;  %v105_v11 = vadd.f32 1e-05, %v104_v7 }
  0x39   :  { %v2073_v8 = vmul.f32 %v2070_v6, %v885_v28  ;;  %v165_v28 = vadd.f32 %v164_v22, %v163_v21  ;;  %v900_v19 = vmul.f32 %v2070_v6, %v2023_v26 }
  0x3a   :  { %v860_v14 = vadd.f32 1e-05, %v859_v9 }
  0x3b   :  { %v166_v33 = vrot.slane %v165_v28, 4 }
  0x3d   :  { %v167_v42 = vadd.f32 %v166_v33, %v165_v28  ;;  %v901_v28 = vmul.f32 %v2070_v6, %v2025_v27  ;;  %v2116_v33 = vsel %vm71_vm2, 1.0, %v1907_v40 }
  0x3f   :  { %v168_v49 = vrot.slane %v167_v42, 2 }
  0x41   :  { %v169_v52 = vadd.f32 %v168_v49, %v167_v42 }
  0x43   :  { %v170_v56 = vrot.slane %v169_v52, 1 }
  0x45   :  { %v171_v59 = vadd.f32 %v170_v56, %v169_v52 }
  0x47   :  { %v172_v62 = vmul.f32 0.041666668, %v171_v59 }
  0x49   :  { %v173_v1 = vadd.f32 1e-05, %v172_v62 }
  0x4b   :  { %1799 = vrsqrt.f32 %v173_v1 }
  0x4c   :  { %1801 = vrsqrt.f32 %v105_v11  ;;  %v2147_v11 = vld [vmem:[%s2507_s3 + $0x10] sm:$0xff] }
  0x4d   :  { %1803 = vrsqrt.f32 %v860_v14 }
  0x55   :  { %v1800_v15 = vpop.eup %1799 }
  0x56   :  { %v175_v18 = vmul.f32 %v1800_v15, %v158_v12  ;;  %v176_v25 = vmul.f32 %v1800_v15, %v2075_v13  ;;  %v177_v43 = vmul.f32 %v1800_v15, %v2077_v16  ;;  %v1802_v44 = vpop.eup %1801 }
  0x57   :  { %v2120_v45 = vpop.eup %1803  ;;  %v108_v55 = vmul.f32 %v1802_v44, %v2087_v30  ;;  %v107_v56 = vmul.f32 %v1802_v44, %v2084_v29  ;;  %v109_v4 = vmul.f32 %v1802_v44, %v2094_v34 }
  0x58   :  { %v863_v16 = vmul.f32 %v2120_v45, %v2091_v32  ;;  %v862_v57 = vmul.f32 %v2120_v45, %v2089_v31 }
  0x81   :  { %v199_v20 = vpop.permute.xlu1 %198 }
  0x82   :  { %v181_v21 = vpop.permute.xlu0 %180 }
  0x83   :  { %v193_v22 = vmul.f32 %v181_v21, %v175_v18  ;;  %v903_v24 = vmul.f32 %v900_v19, %v181_v21  ;;  %v2166_v19 = vld [vmem:[%s2507_s3 + $0x18] sm:$0xff] }
  0x85   :  { %v906_v35 = vadd.f32 %v903_v24, %v199_v20  ;;  %v211_v36 = vadd.f32 %v199_v20, %v193_v22  ;;  %v204_v12 = vpop.permute.xlu1 %203  ;;  %v2175_v24 = vld [vmem:[%s2507_s3 + $0x20] sm:$0xff] }
  0x86   :  { %v186_v39 = vpop.permute.xlu0 %185 }
  0x87   :  { %v909_v26 = vmul.f32 %v2116_v33, %v906_v35  ;;  %v194_v41 = vmul.f32 %v186_v39, %v176_v25  ;;  %v904_v42 = vmul.f32 %v901_v28, %v186_v39  ;;  %v214_v6 = vmul.f32 %v2116_v33, %v211_v36  ;;  %v2188_v35 = vld [vmem:[%s2507_s3 + $0x28] sm:$0xff] }
  0x88   :  { %v2206_v39 = vld [vmem:[%s2506_s2 + $0x8] sm:$0xff] }
  0x89   :  { %v212_v13 = vadd.f32 %v204_v12, %v194_v41  ;;  %v907_v48 = vadd.f32 %v904_v42, %v204_v12  ;;  %v209_v49 = vpop.permute.xlu1 %208  ;;  %v2194_v12 = vld [vmem:[%s2506_s2] sm:$0xff] }
  0x8a   :  { %v191_v27 = vpop.permute.xlu0 %190 }
  0x8b   :  { %v910_v50 = vmul.f32 %v2116_v33, %v907_v48  ;;  %v195_v51 = vmul.f32 %v191_v27, %v177_v43  ;;  %v905_v52 = vmul.f32 %v2073_v8, %v191_v27  ;;  %v215_v53 = vmul.f32 %v2116_v33, %v212_v13 }
  0x8d   :  { %v213_v58 = vadd.f32 %v209_v49, %v195_v51  ;;  %v908_v59 = vadd.f32 %v905_v52, %v209_v49  ;;  %v1759_v60 = vpack.c.bf16 %v215_v53, %v214_v6  ;;  %v2132_v61 = vpack.c.bf16 %v910_v50, %v909_v26  ;;  %v118_v62 = vpop.permute.xlu1 %117  ;;  %v2217_v26 = vld [vmem:[%s2506_s2 + $0x10] sm:$0xff] }
  0x8e   :  { %v113_v63 = vpop.permute.xlu0 %112  ;;  %v126_v32 = vmul.f32 %v118_v62, %v108_v55  ;;  %v866_v0 = vmul.f32 %v863_v16, %v118_v62 }
  0x8f   :  { %1760 = vmatprep.subr.bf16.mxu1 %v1759_v60  ;;  %v216_v8 = vmul.f32 %v2116_v33, %v213_v58  ;;  %v2136_v30 = vmul.f32 %v2116_v33, %v908_v59  ;;  %v125_v29 = vmul.f32 %v113_v63, %v107_v56  ;;  %v865_v1 = vmul.f32 %v862_v57, %v113_v63 }
  0x90   :  { %1762 = vmatpush3.bf16.msra.mxu1 %v1759_v60 }
  0x91   :  { %1625 = vmatprep.subr.mxu1 %v216_v8  ;;  %v136_v31 = vpop.permute.xlu1 %135 }
  0x92   :  { %v131_v2 = vpop.permute.xlu0 %130  ;;  %v144_v5 = vadd.f32 %v136_v31, %v126_v32  ;;  %v869_v7 = vadd.f32 %v866_v0, %v136_v31 }
  0x93   :  { %v143_v9 = vadd.f32 %v131_v2, %v125_v29  ;;  %v868_v10 = vadd.f32 %v865_v1, %v131_v2 }
  0x94   :  { %1626 = vmatpush3.msra.mxu1 %v216_v8  ;;  %v2150_v14 = vmul.f32 %v2116_v33, %v869_v7  ;;  %v147_v17 = vmul.f32 %v2116_v33, %v144_v5 }
  0x95   :  { %v2153_v15 = vmul.f32 %v2116_v33, %v868_v10  ;;  %1628 = vmatmul.mubr.msk.f32.vlgmr.msra.gmra.mrb[0].mxu1 %vm217_vm0, %v2141_v3  ;;  %v146_v34 = vmul.f32 %v2116_v33, %v143_v9  ;;  %1766 = vmatprep.subr.bf16.mxu1 %v1905_v38  ;;  %v2177_v25 = vpop.permute.xlu1 %140 }
  0x96   :  { %v2159_v18 = vpop.permute.xlu0 %122  ;;  %1630 = vmatprep.mubr.msk.f32.mxu1 %vm217_vm0, %v2147_v11 }
  0x97   :  { %v1773_v20 = vpack.c.bf16 %v2150_v14, %v2153_v15  ;;  %v127_v21 = vmul.f32 %v2159_v18, %v109_v4  ;;  %v1757_v22 = vpack.c.bf16 %v147_v17, %v146_v34  ;;  %v2349_v14 = vld [vmem:[%s2508_s4 + $0x10] sm:$0xff] }
  0x99   :  { %v145_v28 = vadd.f32 %v2177_v25, %v127_v21  ;;  %1758 = vmatpush3.bf16.msra.mxu0 %v1757_v22  ;;  %1631 = vmatmul.mubr.msk.f32.gmra.mrb[2].mxu1 %vm217_vm0, %v2166_v19 }
  0x9a   :  { %1610 = vmatprep.subr.mxu0 %v1907_v40  ;;  %1633 = vmatprep.mubr.msk.f32.mxu1 %vm217_vm0, %v2175_v24 }
  0x9b   :  { %v148_v36 = vmul.f32 %v2116_v33, %v145_v28 }
  0x9d   :  { %1611 = vmatpush3.msra.mxu0 %v148_v36  ;;  %1634 = vmatmul.mubr.msk.f32.gmra.mrb[4].mxu1 %vm217_vm0, %v2188_v35 }
  0x9e   :  { %1613 = vmatmul.mubr.msk.f32.vlgmr.msra.gmra.mrb[0].mxu0 %vm217_vm0, %v2194_v12  ;;  %1763 = vmatprep.subr.bf16.mxu0 %v1905_v38 }
  0x9f   :  { %1615 = vmatprep.mubr.msk.f32.mxu0 %vm1906_vm1, %v1907_v40  ;;  %1657 = vmatprep.mubr.msk.f32.mxu1 %vm1906_vm1, %v1907_v40 }
  0xa2   :  { %1616 = vmatmul.mubr.msk.f32.gmra.mrb[2].mxu0 %vm217_vm0, %v2206_v39 }
  0xa3   :  { %1618 = vmatprep.mubr.msk.f32.mxu0 %vm1906_vm1, %v1907_v40 }
  0xa6   :  { %1619 = vmatmul.mubr.msk.f32.gmra.mrb[4].mxu0 %vm217_vm0, %v2217_v26 }
  0xa7   :  { %1642 = vmatprep.mubr.msk.f32.mxu0 %vm1906_vm1, %v1907_v40 }
 0x168   :  { %v2223_v41 = vpop.f32.mrb[0].mxu1 }
 0x169   :  { %v2225_v42 = vpop.f32.mrb[1].mxu1  ;;  %v451_v43 = vmul.f32 %v2223_v41, %v2223_v41 }
 0x16a   :  { %v450_v44 = vmul.f32 %v2225_v42, %v2225_v42 }
 0x16b   :  { %455 = vadd.xlane.f32.xlu1 %v451_v43 }
 0x16c   :  { %453 = vadd.xlane.f32.xlu0 %v450_v44  ;;  %v2231_v13 = vpop.f32.mrb[2].mxu1 }
 0x16d   :  { %v2233_v48 = vpop.f32.mrb[3].mxu1 }
 0x16e   :  { %v452_v49 = vmul.f32 %v2233_v48, %v2233_v48 }
 0x170   :  { %457 = vadd.xlane.f32.xlu0 %v452_v49  ;;  %v2237_v27 = vpop.f32.mrb[4].mxu1 }
 0x171   :  { %v2239_v6 = vpop.f32.mrb[0].mxu0  ;;  %v2241_v50 = vpop.f32.mrb[5].mxu1 }
 0x172   :  { %v1770_v51 = vpack.c.bf16 %v2241_v50, %v2231_v13  ;;  %v420_v52 = vmul.f32 %v2239_v6, %v2239_v6  ;;  %v1614_v53 = vpop.f32.mrb[1].mxu0  ;;  %v2296_v50 = vld [vmem:[%s2514_s10] sm:$0xff] }
 0x174   :  { %423 = vadd.xlane.f32.xlu0 %v420_v52 }
 0x175   :  { %v2247_v55 = vpop.f32.mrb[2].mxu0 }
 0x176   :  { %v421_v16 = vmul.f32 %v2247_v55, %v2247_v55  ;;  %v1617_v56 = vpop.f32.mrb[3].mxu0 }
 0x178   :  { %425 = vadd.xlane.f32.xlu1 %v421_v16 }
 0x179   :  { %v2251_v57 = vpop.f32.mrb[4].mxu0 }
 0x17a   :  { %v422_v58 = vmul.f32 %v2251_v57, %v2251_v57  ;;  %v1620_v59 = vpop.f32.mrb[5].mxu0 }
 0x17c   :  { %427 = vadd.xlane.f32.xlu0 %v422_v58 }
 0x1f8   :  { %v456_v60 = vpop.xlane.xlu1 %455 }
 0x1f9   :  { %1805 = vrsqrt.f32 %v456_v60  ;;  %v454_v62 = vpop.xlane.xlu0 %453  ;;  %vm468_vm3 = vcmp.eq.f32.partialorder %v456_v60, inf  ;;  %vm470_vm4 = vcmp.eq.f32.partialorder %v456_v60, 0.0  ;;  %v471_v1 = vand.u32 2147483648, %v456_v60 }
 0x1fa   :  { %1807 = vrsqrt.f32 %v454_v62  ;;  %vm461_vm5 = vcmp.eq.f32.partialorder %v454_v62, inf  ;;  %v464_v5 = vand.u32 2147483648, %v454_v62  ;;  %vm463_vm6 = vcmp.eq.f32.partialorder %v454_v62, 0.0 }
 0x1fd   :  { %v458_v63 = vpop.xlane.xlu0 %457 }
 0x1fe   :  { %1809 = vrsqrt.f32 %v458_v63  ;;  %vm475_vm7 = vcmp.eq.f32.partialorder %v458_v63, inf  ;;  %v478_v36 = vand.u32 2147483648, %v458_v63  ;;  %vm477_vm8 = vcmp.eq.f32.partialorder %v458_v63, 0.0 }
 0x201   :  { %v424_v8 = vpop.xlane.xlu0 %423 }
 0x202   :  { %1811 = vrsqrt.f32 %v424_v8  ;;  %vm431_vm9 = vcmp.eq.f32.partialorder %v424_v8, inf  ;;  %v434_v52 = vand.u32 2147483648, %v424_v8  ;;  %vm433_vm10 = vcmp.eq.f32.partialorder %v424_v8, 0.0 }
 0x203   :  { %v1806_v32 = vpop.eup %1805 }
 0x204   :  { %v1808_v0 = vpop.eup %1807  ;;  %v467_v29 = vmul.f32 %v1806_v32, %v456_v60 }
 0x205   :  { %v460_v31 = vmul.f32 %v1808_v0, %v454_v62  ;;  %v426_v2 = vpop.xlane.xlu1 %425 }
 0x206   :  { %v469_v4 = vsel %vm468_vm3, %v456_v60, %v467_v29  ;;  %1813 = vrsqrt.f32 %v426_v2  ;;  %vm438_vm11 = vcmp.eq.f32.partialorder %v426_v2, inf  ;;  %v441_v60 = vand.u32 2147483648, %v426_v2 }
 0x207   :  { %v472_v7 = vsel %vm470_vm4, %v471_v1, %v469_v4  ;;  %v462_v9 = vsel %vm461_vm5, %v454_v62, %v460_v31  ;;  %vm440_vm12 = vcmp.eq.f32.partialorder %v426_v2, 0.0 }
 0x208   :  { %v1810_v10 = vpop.eup %1809  ;;  %v490_v34 = vmax.f32 %v472_v7, 1e-12  ;;  %v465_v17 = vsel %vm463_vm6, %v464_v5, %v462_v9 }
 0x209   :  { %v489_v21 = vmax.f32 %v465_v17, 1e-12  ;;  %v474_v22 = vmul.f32 %v1810_v10, %v458_v63  ;;  %v428_v28 = vpop.xlane.xlu0 %427 }
 0x20a   :  { %1815 = vrcp.f32 %v490_v34  ;;  %vm445_vm13 = vcmp.eq.f32.partialorder %v428_v28, inf  ;;  %v448_v7 = vand.u32 2147483648, %v428_v28  ;;  %vm447_vm14 = vcmp.eq.f32.partialorder %v428_v28, 0.0 }
 0x20b   :  { %1817 = vrcp.f32 %v489_v21  ;;  %v476_v43 = vsel %vm475_vm7, %v458_v63, %v474_v22 }
 0x20c   :  { %v1812_v44 = vpop.eup %1811  ;;  %v479_v49 = vsel %vm477_vm8, %v478_v36, %v476_v43  ;;  %1819 = vrsqrt.f32 %v428_v28  ;;  %v2267_v36 = vld [vmem:[%s2513_s9 + $0x8] sm:$0xff] }
 0x20d   :  { %v430_v53 = vmul.f32 %v1812_v44, %v424_v8  ;;  %v491_v16 = vmax.f32 %v479_v49, 1e-12  ;;  %v2276_v49 = vld [vmem:[%s2513_s9 + $0x10] sm:$0xff] }
 0x20f   :  { %v432_v56 = vsel %vm431_vm9, %v424_v8, %v430_v53  ;;  %1821 = vrcp.f32 %v491_v16 }
 0x210   :  { %v1814_v58 = vpop.eup %1813  ;;  %v435_v59 = vsel %vm433_vm10, %v434_v52, %v432_v56 }
 0x211   :  { %v480_v62 = vmax.f32 %v435_v59, 1e-12  ;;  %v437_v32 = vmul.f32 %v1814_v58, %v426_v2 }
 0x213   :  { %1823 = vrcp.f32 %v480_v62  ;;  %v439_v0 = vsel %vm438_vm11, %v426_v2, %v437_v32  ;;  %v2260_v2 = vld [vmem:[%s2513_s9] sm:$0xff] }
 0x214   :  { %v1816_v63 = vpop.eup %1815  ;;  %v442_v29 = vsel %vm440_vm12, %v441_v60, %v439_v0  ;;  %v2309_v0 = vld [vmem:[%s2514_s10 + $0x10] sm:$0xff] }
 0x215   :  { %v1818_v1 = vpop.eup %1817  ;;  %v481_v31 = vmax.f32 %v442_v29, 1e-12  ;;  %v499_v4 = vmul.f32 %v1816_v63, %v2223_v41 }
 0x216   :  { %v1820_v5 = vpop.eup %1819  ;;  %v498_v8 = vmul.f32 %v1818_v1, %v2225_v42 }
 0x217   :  { %1825 = vrcp.f32 %v481_v31  ;;  %v444_v9 = vmul.f32 %v1820_v5, %v428_v28 }
 0x218   :  { %v1764_v10 = vpack.c.bf16 %v499_v4, %v498_v8 }
 0x219   :  { %v446_v34 = vsel %vm445_vm13, %v428_v28, %v444_v9  ;;  %v1822_v41 = vpop.eup %1821 }
 0x21a   :  { %v449_v17 = vsel %vm447_vm14, %v448_v7, %v446_v34  ;;  %1765 = vmatpush3.bf16.xpose.msra.mxu0 %v1764_v10  ;;  %v500_v28 = vmul.f32 %v1822_v41, %v2233_v48 }
 0x21b   :  { %v482_v21 = vmax.f32 %v449_v17, 1e-12  ;;  %1640 = vmatprep.subr.mxu0 %v1907_v40 }
 0x21d   :  { %v1824_v22 = vpop.eup %1823  ;;  %1827 = vrcp.f32 %v482_v21 }
 0x21e   :  { %v484_v42 = vmul.f32 %v1824_v22, %v2260_v2 }
 0x220   :  { %583 = vperm.xlu1 %1796, %v484_v42  }
 0x221   :  { %v1826_v43 = vpop.eup %1825 }
 0x222   :  { %1641 = vmatpush3.xpose.msra.mxu0 %v500_v28  ;;  %v486_v44 = vmul.f32 %v1826_v43, %v2267_v36 }
 0x223   :  { %1769 = vmatprep.subr.bf16.mxu0 %v1905_v38 }
 0x224   :  { %588 = vperm.xlu0 %1795, %v486_v44  }
 0x225   :  { %1643 = vmatmul.mubr.f32.vlgmr.msra.gmra.mrb[6].mxu0 %v2239_v6 }
 0x226   :  { %1771 = vmatpush3.bf16.msra.mxu0 %v1770_v51  ;;  %1645 = vmatprep.mubr.msk.f32.mxu0 %vm1906_vm1, %v1907_v40 }
 0x227   :  { %v1828_v48 = vpop.eup %1827  ;;  %1670 = vmatprep.subr.mxu0 %v1907_v40 }
 0x228   :  { %v488_v52 = vmul.f32 %v1828_v48, %v2276_v49 }
 0x229   :  { %1646 = vmatmul.mubr.f32.gmra.mrb[8].mxu0 %v2247_v55 }
 0x22a   :  { %593 = vperm.xlu1 %1796, %v488_v52   ;;  %1671 = vmatpush3.msra.mxu0 %v2237_v27 }
 0x22b   :  { %1776 = vmatprep.subr.bf16.mxu0 %v2132_v61  ;;  %1648 = vmatprep.mubr.msk.f32.mxu0 %vm1906_vm1, %v1907_v40 }
 0x22d   :  { %1649 = vmatmul.mubr.f32.gmra.mrb[10].mxu0 %v2251_v57  ;;  %v2302_v57 = vld [vmem:[%s2514_s10 + $0x8] sm:$0xff] }
 0x22e   :  { %1672 = vmatprep.mubr.msk.f32.mxu0 %vm1906_vm1, %v1907_v40 }
 0x29f   :  { %v584_v13 = vpop.permute.xlu1 %583 }
 0x2a3   :  { %v589_v53 = vpop.permute.xlu0 %588 }
 0x2a9   :  { %v594_v62 = vpop.permute.xlu1 %593 }
 0x2f8   :  { %v567_v6 = vpop.f32.mrb[6].mxu0 }
 0x2f9   :  { %v596_v51 = vmul.f32 %v584_v13, %v567_v6  ;;  %v1644_v55 = vpop.f32.mrb[7].mxu0 }
 0x2fb   :  { %v599_v27 = vadd.f32 %v596_v51, %v2296_v50 }
 0x2fc   :  { %v572_v16 = vpop.f32.mrb[8].mxu0 }
 0x2fd   :  { %v597_v56 = vmul.f32 %v589_v53, %v572_v16  ;;  %v1647_v58 = vpop.f32.mrb[9].mxu0  ;;  %v602_v59 = vsel %vm217_vm0, %v599_v27, -inf }
 0x2fe   :  { %603 = vmax.xlane.f32.xlu1 %v602_v59 }
 0x2ff   :  { %v600_v60 = vadd.f32 %v597_v56, %v2302_v57 }
 0x300   :  { %v577_v32 = vpop.f32.mrb[10].mxu0 }
 0x301   :  { %v598_v63 = vmul.f32 %v594_v62, %v577_v32  ;;  %v1650_v29 = vpop.f32.mrb[11].mxu0  ;;  %v605_v1 = vsel %vm217_vm0, %v600_v60, -inf  ;;  %v864_v32 = vmul.f32 %v2120_v45, %v2100_v37  ;;  %v2338_v37 = vld [vmem:[%s2508_s4 + $0x8] sm:$0xff] }
 0x302   :  { %606 = vmax.xlane.f32.xlu0 %v605_v1 }
 0x303   :  { %v601_v31 = vadd.f32 %v598_v63, %v2309_v0 }
 0x305   :  { %v608_v4 = vsel %vm217_vm0, %v601_v31, -inf }
 0x306   :  { %609 = vmax.xlane.f32.xlu0 %v608_v4 }
 0x38b   :  { %v604_v5 = vpop.xlane.xlu1 %603 }
 0x38c   :  { %v611_v7 = vsub.f32 %v599_v27, %v604_v5  ;;  %v867_v5 = vmul.f32 %v864_v32, %v2159_v18 }
 0x38e   :  { %v614_v8 = vmul.f32 1.442695, %v611_v7 }
 0x38f   :  { %v607_v9 = vpop.xlane.xlu0 %606 }
 0x390   :  { %1829 = vpow2.f32 %v614_v8  ;;  %v612_v10 = vsub.f32 %v600_v60, %v607_v9  ;;  %v2324_v8 = vld [vmem:[%s2508_s4] sm:$0xff]  ;;  %v870_v9 = vadd.f32 %v867_v5, %v2177_v25 }
 0x392   :  { %v616_v34 = vmul.f32 1.442695, %v612_v10  ;;  %v873_v45 = vmul.f32 %v2116_v33, %v870_v9 }
 0x393   :  { %v610_v17 = vpop.xlane.xlu0 %609 }
 0x394   :  { %1831 = vpow2.f32 %v616_v34  ;;  %v613_v21 = vsub.f32 %v601_v31, %v610_v17 }
 0x396   :  { %v618_v41 = vmul.f32 1.442695, %v613_v21 }
 0x398   :  { %1833 = vpow2.f32 %v618_v41 }
 0x39a   :  { %v1830_v22 = vpop.eup %1829 }
 0x39b   :  { %v620_v42 = vsel %vm217_vm0, %v1830_v22, 0.0 }
 0x39c   :  { %621 = vadd.xlane.f32.xlu1 %v620_v42 }
 0x39e   :  { %v1832_v28 = vpop.eup %1831 }
 0x39f   :  { %v623_v43 = vsel %vm217_vm0, %v1832_v28, 0.0 }
 0x3a0   :  { %624 = vadd.xlane.f32.xlu0 %v623_v43 }
 0x3a2   :  { %v1834_v44 = vpop.eup %1833 }
 0x3a3   :  { %v626_v48 = vsel %vm217_vm0, %v1834_v44, 0.0 }
 0x3a4   :  { %627 = vadd.xlane.f32.xlu1 %v626_v48 }
 0x429   :  { %v622_v52 = vpop.xlane.xlu1 %621 }
 0x42a   :  { %1835 = vrcp.f32 %v622_v52 }
 0x42d   :  { %v625_v13 = vpop.xlane.xlu0 %624 }
 0x42e   :  { %1837 = vrcp.f32 %v625_v13 }
 0x431   :  { %v628_v6 = vpop.xlane.xlu1 %627 }
 0x432   :  { %1839 = vrcp.f32 %v628_v6 }
 0x434   :  { %v1836_v51 = vpop.eup %1835 }
 0x435   :  { %v632_v55 = vmul.f32 %v1836_v51, %v622_v52 }
 0x437   :  { %v635_v27 = vsub.f32 2.0, %v632_v55 }
 0x438   :  { %v1838_v53 = vpop.eup %1837 }
 0x439   :  { %v633_v16 = vmul.f32 %v1838_v53, %v625_v13  ;;  %v638_v56 = vmul.f32 %v1836_v51, %v635_v27 }
 0x43b   :  { %v636_v58 = vsub.f32 2.0, %v633_v16  ;;  %v641_v63 = vmul.f32 %v1830_v22, %v638_v56 }
 0x43c   :  { %v1840_v59 = vpop.eup %1839 }
 0x43d   :  { %v639_v60 = vmul.f32 %v1838_v53, %v636_v58  ;;  %v634_v62 = vmul.f32 %v1840_v59, %v628_v6 }
 0x43f   :  { %v642_v29 = vmul.f32 %v1832_v28, %v639_v60  ;;  %v637_v1 = vsub.f32 2.0, %v634_v62 }
 0x441   :  { %v640_v31 = vmul.f32 %v1840_v59, %v637_v1  ;;  %v1767_v4 = vpack.c.bf16 %v642_v29, %v641_v63 }
 0x443   :  { %1768 = vmatpush3.bf16.msra.mxu1 %v1767_v4  ;;  %v643_v7 = vmul.f32 %v1834_v44, %v640_v31 }
 0x444   :  { %1655 = vmatprep.subr.mxu1 %v1907_v40 }
 0x447   :  { %1656 = vmatpush3.msra.mxu1 %v643_v7 }
 0x448   :  { %1658 = vmatmul.mubr.msk.f32.vlgmr.msra.gmra.mrb[6].mxu1 %vm217_vm0, %v2324_v8  ;;  %1772 = vmatprep.subr.bf16.mxu1 %v1905_v38 }
 0x449   :  { %1774 = vmatpush3.bf16.msra.mxu1 %v1773_v20  ;;  %1660 = vmatprep.mubr.msk.f32.mxu1 %vm1906_vm1, %v1907_v40 }
 0x44a   :  { %1685 = vmatprep.subr.mxu1 %v1907_v40 }
 0x44c   :  { %1661 = vmatmul.mubr.msk.f32.gmra.mrb[8].mxu1 %vm217_vm0, %v2338_v37 }
 0x44d   :  { %1686 = vmatpush3.msra.mxu1 %v873_v45  ;;  %1663 = vmatprep.mubr.msk.f32.mxu1 %vm1906_vm1, %v1907_v40 }
 0x44e   :  { %1779 = vmatprep.subr.bf16.mxu1 %v1905_v38 }
 0x450   :  { %1664 = vmatmul.mubr.msk.f32.gmra.mrb[10].mxu1 %vm217_vm0, %v2349_v14 }
 0x451   :  { %1687 = vmatprep.mubr.msk.f32.mxu1 %vm1906_vm1, %v1907_v40 }
 0x454   :  { %1688 = vmatmul.mubr.msk.f32.vlgmr.msra.gmra.mrb[12].mxu1 %vm217_vm0, %v2194_v12 }
 0x455   :  { %1690 = vmatprep.mubr.msk.f32.mxu1 %vm1906_vm1, %v1907_v40 }
 0x458   :  { %1691 = vmatmul.mubr.msk.f32.gmra.mrb[14].mxu1 %vm217_vm0, %v2206_v39 }
 0x459   :  { %1693 = vmatprep.mubr.msk.f32.mxu1 %vm1906_vm1, %v1907_v40 }
 0x45c   :  { %1694 = vmatmul.mubr.msk.f32.gmra.mrb[16].mxu1 %vm217_vm0, %v2217_v26 }
 0x45d   :  { %1717 = vmatprep.mubr.msk.f32.mxu1 %vm1906_vm1, %v1907_v40 }
 0x51b   :  { %v719_v33 = vpop.f32.mrb[6].mxu1 }
 0x51c   :  { %v1659_v15 = vpop.f32.mrb[7].mxu1  ;;  %1673 = vmatmul.mubr.msk.f32.vlgmr.msra.gmra.mrb[12].mxu0 %vm217_vm0, %v719_v33 }
 0x51d   :  { %1778 = vmatpush3.bf16.msra.mxu0 %v2132_v61  ;;  %1675 = vmatprep.mubr.msk.f32.mxu0 %vm1906_vm1, %v1907_v40 }
 0x51e   :  { %1700 = vmatprep.subr.mxu0 %v2136_v30 }
 0x51f   :  { %v724_v18 = vpop.f32.mrb[8].mxu1 }
 0x520   :  { %v1662_v20 = vpop.f32.mrb[9].mxu1  ;;  %1676 = vmatmul.mubr.msk.f32.gmra.mrb[14].mxu0 %vm217_vm0, %v724_v18 }
 0x521   :  { %1701 = vmatpush3.msra.mxu0 %v2136_v30  ;;  %1678 = vmatprep.mubr.msk.f32.mxu0 %vm1906_vm1, %v1907_v40 }
 0x522   :  { %1782 = vmatprep.subr.bf16.mxu0 %v1905_v38 }
 0x523   :  { %v729_v25 = vpop.f32.mrb[10].mxu1 }
 0x524   :  { %v1665_v12 = vpop.f32.mrb[11].mxu1  ;;  %1679 = vmatmul.mubr.msk.f32.gmra.mrb[16].mxu0 %vm217_vm0, %v729_v25 }
 0x525   :  { %1702 = vmatprep.mubr.msk.f32.mxu0 %vm217_vm0, %v2019_v23 }
 0x527   :  { %v2393_v61 = vpop.f32.mrb[12].mxu1 }
 0x528   :  { %1703 = vmatmul.mubr.msk.f32.vlgmr.msra.gmra.mrb[18].mxu0 %vm217_vm0, %v2141_v3  ;;  %v1689_v23 = vpop.f32.mrb[13].mxu1 }
 0x529   :  { %1705 = vmatprep.mubr.msk.f32.mxu0 %vm217_vm0, %v2147_v11 }
 0x52b   :  { %v2395_v30 = vpop.f32.mrb[14].mxu1 }
 0x52c   :  { %1706 = vmatmul.mubr.msk.f32.gmra.mrb[20].mxu0 %vm217_vm0, %v2166_v19  ;;  %v1692_v3 = vpop.f32.mrb[15].mxu1  ;;  %v1088_v13 = vmul.f32 %v2395_v30, %v2395_v30 }
 0x52d   :  { %1708 = vmatprep.mubr.msk.f32.mxu0 %vm217_vm0, %v2175_v24 }
 0x52f   :  { %v2397_v39 = vpop.f32.mrb[16].mxu1 }
 0x530   :  { %1709 = vmatmul.mubr.msk.f32.gmra.mrb[22].mxu0 %vm217_vm0, %v2188_v35  ;;  %v1695_v11 = vpop.f32.mrb[17].mxu1  ;;  %v1089_v48 = vmul.f32 %v2397_v39, %v2397_v39 }
 0x531   :  { %1732 = vmatprep.mubr.msk.f32.mxu0 %vm1906_vm1, %v1907_v40 }
 0x5ef   :  { %v808_v26 = vpop.f32.mrb[12].mxu0 }
 0x5f0   :  { %v822_v19 = vadd.f32 %v808_v26, %v2046_v46  ;;  %v1674_v10 = vpop.f32.mrb[13].mxu0 }
 0x5f2   :  { %825 = vst [vmem:[#allocation2] sm:$0xff] %v822_v19 }
 0x5f3   :  { %v813_v24 = vpop.f32.mrb[14].mxu0 }
 0x5f4   :  { %v823_v35 = vadd.f32 %v813_v24, %v2051_v47  ;;  %v1677_v34 = vpop.f32.mrb[15].mxu0  ;;  %v1087_v47 = vmul.f32 %v2393_v61, %v2393_v61 }
 0x5f6   :  { %826 = vst [vmem:[#allocation2 + $0x8] sm:$0xff] %v823_v35 }
 0x5f7   :  { %v818_v17 = vpop.f32.mrb[16].mxu0 }
 0x5f8   :  { %v824_v21 = vadd.f32 %v818_v17, %v2064_v54  ;;  %v1680_v41 = vpop.f32.mrb[17].mxu0 }
 0x5fa   :  { %827 = vst [vmem:[#allocation2 + $0x10] sm:$0xff] %v824_v21 }
 0x5fb   :  { %v2402_v22 = vpop.f32.mrb[18].mxu0 }
 0x5fc   :  { %v2404_v42 = vpop.f32.mrb[19].mxu0  ;;  %v1118_v28 = vmul.f32 %v2402_v22, %v2402_v22 }
 0x5fd   :  { %v1117_v46 = vmul.f32 %v2404_v42, %v2404_v42 }
 0x5fe   :  { %1122 = vadd.xlane.f32.xlu1 %v1118_v28 }
 0x5ff   :  { %1120 = vadd.xlane.f32.xlu0 %v1117_v46  ;;  %v2412_v43 = vpop.f32.mrb[20].mxu0 }
 0x600   :  { %v2414_v54 = vpop.f32.mrb[21].mxu0 }
 0x601   :  { %v1119_v44 = vmul.f32 %v2414_v54, %v2414_v54 }
 0x602   :  { %1090 = vadd.xlane.f32.xlu1 %v1087_v47 }
 0x603   :  { %1124 = vadd.xlane.f32.xlu0 %v1119_v44  ;;  %v2420_v52 = vpop.f32.mrb[22].mxu0 }
 0x604   :  { %v2424_v6 = vpop.f32.mrb[23].mxu0 }
 0x605   :  { %v1786_v51 = vpack.c.bf16 %v2424_v6, %v2412_v43 }
 0x606   :  { %1094 = vadd.xlane.f32.xlu1 %v1089_v48 }
 0x607   :  { %1092 = vadd.xlane.f32.xlu0 %v1088_v13 }
 0x68b   :  { %v1123_v55 = vpop.xlane.xlu1 %1122 }
 0x68c   :  { %1841 = vrsqrt.f32 %v1123_v55  ;;  %v1121_v27 = vpop.xlane.xlu0 %1120  ;;  %vm1135_vm15 = vcmp.eq.f32.partialorder %v1123_v55, inf  ;;  %vm1137_vm2 = vcmp.eq.f32.partialorder %v1123_v55, 0.0  ;;  %v1138_v32 = vand.u32 2147483648, %v1123_v55 }
 0x68d   :  { %1843 = vrsqrt.f32 %v1121_v27  ;;  %vm1128_vm3 = vcmp.eq.f32.partialorder %v1121_v27, inf  ;;  %vm1130_vm4 = vcmp.eq.f32.partialorder %v1121_v27, 0.0  ;;  %v1131_v1 = vand.u32 2147483648, %v1121_v27 }
 0x68f   :  { %v1091_v53 = vpop.xlane.xlu1 %1090 }
 0x690   :  { %1845 = vrsqrt.f32 %v1091_v53  ;;  %v1125_v16 = vpop.xlane.xlu0 %1124  ;;  %vm1098_vm5 = vcmp.eq.f32.partialorder %v1091_v53, inf  ;;  %vm1100_vm6 = vcmp.eq.f32.partialorder %v1091_v53, 0.0  ;;  %v1101_v7 = vand.u32 2147483648, %v1091_v53 }
 0x691   :  { %1847 = vrsqrt.f32 %v1125_v16  ;;  %vm1142_vm7 = vcmp.eq.f32.partialorder %v1125_v16, inf  ;;  %vm1144_vm8 = vcmp.eq.f32.partialorder %v1125_v16, 0.0  ;;  %v1145_v25 = vand.u32 2147483648, %v1125_v16 }
 0x693   :  { %v1095_v56 = vpop.xlane.xlu1 %1094 }
 0x694   :  { %v1093_v58 = vpop.xlane.xlu0 %1092  ;;  %1849 = vrsqrt.f32 %v1095_v56  ;;  %vm1112_vm9 = vcmp.eq.f32.partialorder %v1095_v56, inf  ;;  %vm1114_vm10 = vcmp.eq.f32.partialorder %v1095_v56, 0.0  ;;  %v1115_v23 = vand.u32 2147483648, %v1095_v56 }
 0x695   :  { %1851 = vrsqrt.f32 %v1093_v58  ;;  %vm1105_vm11 = vcmp.eq.f32.partialorder %v1093_v58, inf  ;;  %v1108_v35 = vand.u32 2147483648, %v1093_v58  ;;  %vm1107_vm12 = vcmp.eq.f32.partialorder %v1093_v58, 0.0 }
 0x696   :  { %v1842_v59 = vpop.eup %1841 }
 0x697   :  { %v1844_v60 = vpop.eup %1843  ;;  %v1134_v62 = vmul.f32 %v1842_v59, %v1123_v55 }
 0x698   :  { %v1127_v63 = vmul.f32 %v1844_v60, %v1121_v27 }
 0x699   :  { %v1136_v29 = vsel %vm1135_vm15, %v1123_v55, %v1134_v62 }
 0x69a   :  { %v1846_v31 = vpop.eup %1845  ;;  %v1139_v4 = vsel %vm1137_vm2, %v1138_v32, %v1136_v29  ;;  %v1129_v5 = vsel %vm1128_vm3, %v1121_v27, %v1127_v63 }
 0x69b   :  { %v1848_v9 = vpop.eup %1847  ;;  %v1157_v45 = vmax.f32 %v1139_v4, 1e-12  ;;  %v1132_v33 = vsel %vm1130_vm4, %v1131_v1, %v1129_v5  ;;  %v1097_v15 = vmul.f32 %v1846_v31, %v1091_v53 }
 0x69c   :  { %v1156_v18 = vmax.f32 %v1132_v33, 1e-12  ;;  %v1141_v20 = vmul.f32 %v1848_v9, %v1125_v16 }
 0x69d   :  { %1853 = vrcp.f32 %v1157_v45  ;;  %v1099_v12 = vsel %vm1098_vm5, %v1091_v53, %v1097_v15 }
 0x69e   :  { %v1850_v3 = vpop.eup %1849  ;;  %1855 = vrcp.f32 %v1156_v18  ;;  %v1102_v11 = vsel %vm1100_vm6, %v1101_v7, %v1099_v12  ;;  %v1143_v26 = vsel %vm1142_vm7, %v1125_v16, %v1141_v20 }
 0x69f   :  { %v1852_v19 = vpop.eup %1851  ;;  %v1147_v10 = vmax.f32 %v1102_v11, 1e-12  ;;  %v1146_v24 = vsel %vm1144_vm8, %v1145_v25, %v1143_v26  ;;  %v1111_v34 = vmul.f32 %v1850_v3, %v1095_v56 }
 0x6a0   :  { %v1158_v17 = vmax.f32 %v1146_v24, 1e-12  ;;  %v1104_v21 = vmul.f32 %v1852_v19, %v1093_v58 }
 0x6a1   :  { %1857 = vrcp.f32 %v1147_v10  ;;  %v1113_v41 = vsel %vm1112_vm9, %v1095_v56, %v1111_v34 }
 0x6a2   :  { %v1106_v28 = vsel %vm1105_vm11, %v1093_v58, %v1104_v21  ;;  %v1116_v46 = vsel %vm1114_vm10, %v1115_v23, %v1113_v41  ;;  %1859 = vrcp.f32 %v1158_v17 }
 0x6a3   :  { %v1109_v47 = vsel %vm1107_vm12, %v1108_v35, %v1106_v28  ;;  %v1149_v44 = vmax.f32 %v1116_v46, 1e-12 }
 0x6a4   :  { %v1148_v48 = vmax.f32 %v1109_v47, 1e-12 }
 0x6a5   :  { %1861 = vrcp.f32 %v1149_v44 }
 0x6a6   :  { %1863 = vrcp.f32 %v1148_v48 }
 0x6a7   :  { %v1854_v13 = vpop.eup %1853 }
 0x6a8   :  { %v1856_v55 = vpop.eup %1855  ;;  %v1166_v27 = vmul.f32 %v1854_v13, %v2402_v22 }
 0x6a9   :  { %v1165_v53 = vmul.f32 %v1856_v55, %v2404_v42 }
 0x6ab   :  { %v1858_v16 = vpop.eup %1857  ;;  %v1780_v59 = vpack.c.bf16 %v1166_v27, %v1165_v53 }
 0x6ac   :  { %v1151_v60 = vmul.f32 %v1858_v16, %v2260_v2  ;;  %v1860_v58 = vpop.eup %1859 }
 0x6ad   :  { %1781 = vmatpush3.bf16.xpose.msra.mxu1 %v1780_v59  ;;  %v1167_v63 = vmul.f32 %v1860_v58, %v2414_v54 }
 0x6ae   :  { %1250 = vperm.xlu0 %1795, %v1151_v60   ;;  %1715 = vmatprep.subr.mxu1 %v1907_v40 }
 0x6af   :  { %v1862_v56 = vpop.eup %1861 }
 0x6b0   :  { %v1864_v62 = vpop.eup %1863  ;;  %v1155_v22 = vmul.f32 %v1862_v56, %v2276_v49 }
 0x6b1   :  { %v1153_v32 = vmul.f32 %v1864_v62, %v2267_v36 }
 0x6b3   :  { %1255 = vperm.xlu1 %1796, %v1153_v32  }
 0x6b5   :  { %1716 = vmatpush3.xpose.msra.mxu1 %v1167_v63 }
 0x6b6   :  { %1785 = vmatprep.subr.bf16.mxu1 %v1905_v38 }
 0x6b7   :  { %1260 = vperm.xlu1 %1796, %v1155_v22  }
 0x6b8   :  { %1718 = vmatmul.mubr.f32.vlgmr.msra.gmra.mrb[18].mxu1 %v2393_v61 }
 0x6b9   :  { %1787 = vmatpush3.bf16.msra.mxu1 %v1786_v51  ;;  %1720 = vmatprep.mubr.msk.f32.mxu1 %vm1906_vm1, %v1907_v40 }
 0x6ba   :  { %1745 = vmatprep.subr.mxu1 %v1907_v40 }
 0x6bc   :  { %1721 = vmatmul.mubr.f32.gmra.mrb[20].mxu1 %v2395_v30 }
 0x6bd   :  { %1723 = vmatprep.mubr.msk.f32.mxu1 %vm1906_vm1, %v1907_v40  ;;  %1746 = vmatpush3.msra.mxu1 %v2420_v52 }
 0x6c0   :  { %1724 = vmatmul.mubr.f32.gmra.mrb[22].mxu1 %v2397_v39 }
 0x6c1   :  { %1747 = vmatprep.mubr.msk.f32.mxu1 %vm1906_vm1, %v1907_v40 }
 0x72d   :  { %v1251_v38 = vpop.permute.xlu0 %1250 }
 0x732   :  { %v1256_v61 = vpop.permute.xlu1 %1255 }
 0x736   :  { %v1261_v51 = vpop.permute.xlu1 %1260 }
 0x78b   :  { %v1234_v2 = vpop.f32.mrb[18].mxu1 }
 0x78c   :  { %v1263_v36 = vmul.f32 %v1251_v38, %v1234_v2  ;;  %v1719_v49 = vpop.f32.mrb[19].mxu1  ;;  %v1878_v38 = vld [vmem:[%s2504_s0 + $0x20] sm:$0xff] }
 0x78d   :  { %v1879_v49 = vld [vmem:[%s2504_s0 + $0x28] sm:$0xff] }
 0x78e   :  { %v1266_v42 = vadd.f32 %v1263_v36, %v2296_v50 }
 0x78f   :  { %v1239_v43 = vpop.f32.mrb[20].mxu1 }
 0x790   :  { %v1264_v54 = vmul.f32 %v1256_v61, %v1239_v43  ;;  %v1722_v30 = vpop.f32.mrb[21].mxu1  ;;  %v1269_v6 = vsel %vm217_vm0, %v1266_v42, -inf }
 0x791   :  { %1270 = vmax.xlane.f32.xlu0 %v1269_v6 }
 0x792   :  { %v1267_v52 = vadd.f32 %v1264_v54, %v2302_v57 }
 0x793   :  { %v1244_v39 = vpop.f32.mrb[22].mxu1 }
 0x794   :  { %v1265_v29 = vmul.f32 %v1261_v51, %v1244_v39  ;;  %v1725_v1 = vpop.f32.mrb[23].mxu1  ;;  %v1272_v31 = vsel %vm217_vm0, %v1267_v52, -inf }
 0x795   :  { %1273 = vmax.xlane.f32.xlu1 %v1272_v31 }
 0x796   :  { %v1268_v4 = vadd.f32 %v1265_v29, %v2309_v0 }
 0x798   :  { %v1275_v5 = vsel %vm217_vm0, %v1268_v4, -inf }
 0x799   :  { %1276 = vmax.xlane.f32.xlu0 %v1275_v5 }
 0x81e   :  { %v1271_v50 = vpop.xlane.xlu0 %1270 }
 0x81f   :  { %v1278_v7 = vsub.f32 %v1266_v42, %v1271_v50 }
 0x821   :  { %v1281_v9 = vmul.f32 1.442695, %v1278_v7 }
 0x822   :  { %v1274_v45 = vpop.xlane.xlu1 %1273 }
 0x823   :  { %1865 = vpow2.f32 %v1281_v9  ;;  %v1279_v33 = vsub.f32 %v1267_v52, %v1274_v45 }
 0x825   :  { %v1283_v15 = vmul.f32 1.442695, %v1279_v33 }
 0x826   :  { %v1277_v57 = vpop.xlane.xlu0 %1276 }
 0x827   :  { %1867 = vpow2.f32 %v1283_v15  ;;  %v1280_v18 = vsub.f32 %v1268_v4, %v1277_v57 }
 0x829   :  { %v1285_v20 = vmul.f32 1.442695, %v1280_v18 }
 0x82b   :  { %1869 = vpow2.f32 %v1285_v20 }
 0x82d   :  { %v1866_v25 = vpop.eup %1865 }
 0x82e   :  { %v1287_v12 = vsel %vm217_vm0, %v1866_v25, 0.0 }
 0x82f   :  { %1288 = vadd.xlane.f32.xlu0 %v1287_v12 }
 0x831   :  { %v1868_v0 = vpop.eup %1867 }
 0x832   :  { %v1290_v23 = vsel %vm217_vm0, %v1868_v0, 0.0 }
 0x833   :  { %1291 = vadd.xlane.f32.xlu1 %v1290_v23 }
 0x835   :  { %v1870_v3 = vpop.eup %1869 }
 0x836   :  { %v1293_v11 = vsel %vm217_vm0, %v1870_v3, 0.0 }
 0x837   :  { %1294 = vadd.xlane.f32.xlu0 %v1293_v11 }
 0x8bc   :  { %v1289_v26 = vpop.xlane.xlu0 %1288 }
 0x8bd   :  { %1871 = vrcp.f32 %v1289_v26 }
 0x8c0   :  { %v1292_v19 = vpop.xlane.xlu1 %1291 }
 0x8c1   :  { %1873 = vrcp.f32 %v1292_v19 }
 0x8c4   :  { %v1295_v10 = vpop.xlane.xlu0 %1294 }
 0x8c5   :  { %1875 = vrcp.f32 %v1295_v10 }
 0x8c7   :  { %v1872_v24 = vpop.eup %1871 }
 0x8c8   :  { %v1299_v35 = vmul.f32 %v1872_v24, %v1289_v26 }
 0x8ca   :  { %v1302_v34 = vsub.f32 2.0, %v1299_v35 }
 0x8cb   :  { %v1874_v17 = vpop.eup %1873 }
 0x8cc   :  { %v1300_v21 = vmul.f32 %v1874_v17, %v1292_v19  ;;  %v1305_v41 = vmul.f32 %v1872_v24, %v1302_v34 }
 0x8ce   :  { %v1303_v28 = vsub.f32 2.0, %v1300_v21  ;;  %v1308_v48 = vmul.f32 %v1866_v25, %v1305_v41 }
 0x8cf   :  { %v1876_v46 = vpop.eup %1875 }
 0x8d0   :  { %v1306_v47 = vmul.f32 %v1874_v17, %v1303_v28  ;;  %v1301_v44 = vmul.f32 %v1876_v46, %v1295_v10 }
 0x8d2   :  { %v1309_v13 = vmul.f32 %v1868_v0, %v1306_v47  ;;  %v1304_v55 = vsub.f32 2.0, %v1301_v44 }
 0x8d4   :  { %v1783_v27 = vpack.c.bf16 %v1309_v13, %v1308_v48  ;;  %v1307_v53 = vmul.f32 %v1876_v46, %v1304_v55 }
 0x8d6   :  { %1784 = vmatpush3.bf16.msra.mxu0 %v1783_v27  ;;  %v1310_v16 = vmul.f32 %v1870_v3, %v1307_v53 }
 0x8d7   :  { %1730 = vmatprep.subr.mxu0 %v1907_v40 }
 0x8da   :  { %1731 = vmatpush3.msra.mxu0 %v1310_v16 }
 0x8db   :  { %1733 = vmatmul.mubr.msk.f32.vlgmr.msra.gmra.mrb[24].mxu0 %vm217_vm0, %v2324_v8 }
 0x8dc   :  { %1735 = vmatprep.mubr.msk.f32.mxu0 %vm1906_vm1, %v1907_v40 }
 0x8df   :  { %1736 = vmatmul.mubr.msk.f32.gmra.mrb[26].mxu0 %vm217_vm0, %v2338_v37 }
 0x8e0   :  { %1738 = vmatprep.mubr.msk.f32.mxu0 %vm1906_vm1, %v1907_v40 }
 0x8e3   :  { %1739 = vmatmul.mubr.msk.f32.gmra.mrb[28].mxu0 %vm217_vm0, %v2349_v14  ;;  %v1877_v14 = vld [vmem:[%s2504_s0 + $0x18] sm:$0xff] }
 0x9ae   :  { %v1377_v59 = vpop.f32.mrb[24].mxu0 }
 0x9af   :  { %v1734_v60 = vpop.f32.mrb[25].mxu0  ;;  %1748 = vmatmul.mubr.msk.f32.vlgmr.msra.gmra.mrb[24].mxu1 %vm217_vm0, %v1377_v59 }
 0x9b0   :  { %1750 = vmatprep.mubr.msk.f32.mxu1 %vm1906_vm1, %v1907_v40 }
 0x9b2   :  { %v1382_v8 = vpop.f32.mrb[26].mxu0 }
 0x9b3   :  { %v1737_v58 = vpop.f32.mrb[27].mxu0  ;;  %1751 = vmatmul.mubr.msk.f32.gmra.mrb[26].mxu1 %vm217_vm0, %v1382_v8 }
 0x9b4   :  { %1753 = vmatprep.mubr.msk.f32.mxu1 %vm1906_vm1, %v1907_v40 }
 0x9b6   :  { %v1387_v37 = vpop.f32.mrb[28].mxu0 }
 0x9b7   :  { %v1740_v56 = vpop.f32.mrb[29].mxu0  ;;  %1754 = vmatmul.mubr.msk.f32.gmra.mrb[28].mxu1 %vm217_vm0, %v1387_v37 }
 0xa82   :  { %v1466_v62 = vpop.f32.mrb[24].mxu1 }
 0xa83   :  { %v1480_v32 = vadd.f32 %v1877_v14, %v1466_v62  ;;  %v1749_v63 = vpop.f32.mrb[25].mxu1 }
 0xa85   :  { %1484 = vst [vmem:[#allocation2 + $0x18] sm:$0xff] %v1480_v32 }
 0xa86   :  { %v1471_v22 = vpop.f32.mrb[26].mxu1 }
 0xa87   :  { %v1481_v2 = vadd.f32 %v1878_v38, %v1471_v22  ;;  %v1752_v36 = vpop.f32.mrb[27].mxu1 }
 0xa89   :  { %1485 = vst [vmem:[#allocation2 + $0x20] sm:$0xff] %v1481_v2 }
 0xa8a   :  { %v1476_v40 = vpop.f32.mrb[28].mxu1 }
 0xa8b   :  { %v1482_v61 = vadd.f32 %v1879_v49, %v1476_v40  ;;  %v1755_v42 = vpop.f32.mrb[29].mxu1 }
 0xa8d   :  { %1486 = vst [vmem:[#allocation2 + $0x28] sm:$0xff] %v1482_v61 }
 0xa8e   :  { %1891 = shalt.err (!%p1888_p4)
}
 0xa8f   :  { %s1892_s2 = scalar_lea.hbm %s2515_s11, 768 }
 0xa90   :  { %p1893_p5 = scmp.ne.s32.totalorder %s2515_s11, %s1892_s2  ;;  %p1896_p6 = scmp.lt.u32.totalorder %s1892_s2, %s2515_s11 }
 0xa92   :  { %p1898_p7 = pnand %p1896_p6, %p1893_p5 }
 0xa94   :  { %1901 = shalt.err (!%p1898_p7)
}
 0xa95   :  { %s1909_s18 = smov 128   ;;  %s1910_s19 = smov 8  }
 0xa96   :  { %1498 = dma.vmem_to_hbm [thread:$0]  %s1493_s30, 768, %s2515_s11, [#allocation3], %s1909_s18, %s1909_s18, %s1910_s19  }
 0xa97   :  { %1902 = dma.done.wait [#allocation3], 768  }
 0xa98   :  { %1903 = vsyncadd [#allocation3], 4294966528 }
 0xa99   :  { %1502 = vsyncpa [#allocation3], 1 }

</bundles_post_ra>
